<compile_context>
chip_gen: v6e
topology: v6e:2x2x1
jax: 0.10.0
libtpu: 0.0.40
codegen_flags: <defaults>
</compile_context>

<pallas_src>
import functools

import jax
import jax.numpy as jnp
from jax.experimental import pallas as pl
from jax.experimental.pallas import tpu as pltpu


def _round_up(x, m):
    return ((x + m - 1) // m) * m


# ----------------------------------------------------------------------------
# Fused SE_Conv_Block kernel (bt batch elements per grid step)
# ----------------------------------------------------------------------------
def _se_conv_block_kernel(
    x_ref,                      # (bt, Cin, HW)  bf16
    maskl_ref, maskr_ref,       # (1, HW) f32 {0,1} column-validity masks (kx=0 / kx=2 taps)
    w1_ref, s1_ref, b1_ref,     # (9, P,  Cin) bf16, (P, 1) f32, (P, 1) f32
    w2_ref, s2_ref, b2_ref,     # (9, C2, P)   bf16, (C2,1) f32, (C2,1) f32
    wd_ref, sd_ref, bd_ref,     # (C2, Cin)    bf16, (C2,1) f32, (C2,1) f32  -- 1x1 downchannel
    fc1w_ref, fc1b_ref,         # (Cr, C2) f32, (Cr, 1) f32
    fc2w_ref, fc2b_ref,         # (C2, Cr) f32, (C2, 1) f32
    w3_ref, s3_ref, b3_ref,     # (9, P,  C2)  bf16, (P, 1) f32, (P, 1) f32
    out_ref,                    # (bt, P, HW)  f32
    att_ref,                    # (bt, C2, 1)  f32
    pad_ref,                    # VMEM (Cmax, PADL + HW + PADL) bf16 zero-halo staging buffer
    *, H, W):
    HW = H * W
    PADL = _round_up(W + 1, 128)      # lane-aligned interior offset; halo >= W+1 each side
    bt = x_ref.shape[0]

    # Zero ONLY the halo strips (perf review #1): the interior is fully overwritten by each
    # conv's staging write, and rows above a conv's channel count are never read.  Doing
    # this every step (cheap: Cmax x 2*PADL) stays correct under v7x megacore sharding.
    zhalo = jnp.zeros((pad_ref.shape[0], PADL), pad_ref.dtype)
    pad_ref[:, 0:PADL] = zhalo
    pad_ref[:, PADL + HW:PADL + HW + PADL] = zhalo

    mask_l = maskl_ref[...] > 0.5      # (1, HW) bool: kx=0 tap is in-row
    mask_r = maskr_ref[...] > 0.5      # (1, HW) bool: kx=2 tap is in-row

    def conv3x3(x_bf, w_ref, scale, shift, relu):
        """3x3 / stride-1 / pad-1 conv + folded BN (+ ReLU) on a (C, HW) bf16 tile.

        Direct tap accumulation (perf review #2): 9 accumulating MXU matmuls read the
        shifted taps straight from the zero-halo staging buffer -- no im2col buffer, no
        store/reload round-trip.  Accumulation is f32; MXU inputs are bf16.
        """
        C = x_bf.shape[0]
        pad_ref[0:C, PADL:PADL + HW] = x_bf.astype(pad_ref.dtype)
        # Hoist the (1,HW)->(C,HW) mask broadcasts out of the 9-tap loop (perf review #7).
        ml = jnp.broadcast_to(mask_l, (C, HW))
        mr = jnp.broadcast_to(mask_r, (C, HW))
        acc = None
        for ky in range(3):
            for kx in range(3):
                off = (ky - 1) * W + (kx - 1)
                tap = pad_ref[0:C, PADL + off:PADL + off + HW]       # (C, HW) bf16
                # Row over/underflow reads zeros from the halo; only the column wrap of the
                # kx != 1 taps needs masking (select, not multiply -> bf16-safe on v5e).
                if kx == 0:
                    tap = jnp.where(ml, tap, 0)
                elif kx == 2:
                    tap = jnp.where(mr, tap, 0)
                d = jnp.dot(w_ref[ky * 3 + kx], tap,
                            preferred_element_type=jnp.float32)      # (Cout, HW) f32
                acc = d if acc is None else acc + d
        y = acc * scale + shift                                       # folded BatchNorm
        return jnp.maximum(y, 0.0) if relu else y

    # Small operands: load once per grid step (resident across the in-kernel batch loop).
    s1 = s1_ref[...]; b1 = b1_ref[...]
    s2 = s2_ref[...]; b2 = b2_ref[...]
    s3 = s3_ref[...]; b3 = b3_ref[...]
    sd = sd_ref[...]; bd = bd_ref[...]
    wd = wd_ref[...]
    fc1w = fc1w_ref[...]; fc1b = fc1b_ref[...]
    fc2w = fc2w_ref[...]; fc2b = fc2b_ref[...]

    @pl.loop(0, bt)                     # amortize per-step overhead over bt images (#6)
    def _(b):
        x = x_ref[b]                                                       # (Cin, HW) bf16

        out1 = conv3x3(x, w1_ref, s1, b1, relu=True)                       # conv1+bn1+relu
        out2 = conv3x3(out1.astype(jnp.bfloat16), w2_ref, s2, b2,
                       relu=False)                                         # conv2+bn2

        # Downchannel residual: true 1x1 conv (single matmul, no halo) + folded BN.
        res = jnp.dot(wd, x, preferred_element_type=jnp.float32) * sd + bd  # (C2, HW) f32

        # Squeeze-excite: avg & max global pools share one fc1 / fc2 matmul pair.
        C2 = out2.shape[0]
        avg = jnp.mean(out2, axis=1, keepdims=True)                        # (C2, 1)
        mx = jnp.max(out2, axis=1, keepdims=True)                          # (C2, 1)
        col = jax.lax.broadcasted_iota(jnp.int32, (C2, 2), 1)
        pooled = jnp.where(col == 0, avg, mx)                              # (C2, 2)
        h1 = jnp.maximum(
            jnp.dot(fc1w, pooled, preferred_element_type=jnp.float32) + fc1b, 0.0)
        gates = jax.nn.sigmoid(
            jnp.dot(fc2w, h1, preferred_element_type=jnp.float32) + fc2b)  # (C2, 2)
        att = gates[:, 0:1] + gates[:, 1:2]                                # avg_att + max_att
        att_ref[b] = att

        # SE apply + residual + ReLU, then conv3+bn3+relu -- everything stays in VMEM.
        combined = jnp.maximum(out2 * att + res, 0.0)                      # (C2, HW) f32
        out_ref[b] = conv3x3(combined.astype(jnp.bfloat16), w3_ref, s3, b3,
                             relu=True).astype(out_ref.dtype)


# ----------------------------------------------------------------------------
# Wrapper: parameter packing + single pallas_call
# ----------------------------------------------------------------------------
def _fold_bn(bn, eps=1e-5):
    gamma, beta, mean, var = bn
    scale = gamma / jnp.sqrt(var + eps)
    shift = beta - mean * scale
    return scale.reshape(-1, 1).astype(jnp.float32), shift.reshape(-1, 1).astype(jnp.float32)


def _pack_conv3x3_weight(w_hwio):
    """HWIO (3,3,Cin,Cout) -> (9, Cout, Cin) tap-major bf16 stack (k = ky*3 + kx)."""
    kh, kw, cin, cout = w_hwio.shape
    w = w_hwio.reshape(kh * kw, cin, cout)
    return jnp.transpose(w, (0, 2, 1)).astype(jnp.bfloat16)


def _vmem_limit_bytes():
    """Generation-aware scoped-VMEM budget (perf review #4): ~75% of physical VMEM
    (v5e/v6e 128 MiB -> ~96 MiB, v7x 64 MiB -> ~48 MiB), clamped to a sane range."""
    cap = 64 * 1024 * 1024
    try:
        cap = pltpu.get_tpu_info().vmem_capacity_bytes
    except Exception:
        pass
    return int(max(32 * 1024 * 1024, min(cap * 3 // 4, 112 * 1024 * 1024)))


def se_conv_block_forward(x_nchw, params):
    N, Cin, H, W = x_nchw.shape
    P = params["w1"].shape[-1]
    C2 = 2 * P
    Cr = params["fc1_w"].shape[-1]
    HW = H * W
    PADL = _round_up(W + 1, 128)
    Cmax = _round_up(max(Cin, C2), 8)

    # Batch tile (perf review #6): largest divisor of N that is <= 8.
    bt = 1
    for cand in range(1, min(N, 8) + 1):
        if N % cand == 0:
            bt = cand

    # NCHW is already channels-first: flatten the spatial dims only (free, no transpose)
    # and cast once to bf16 so the conv taps feed the MXU natively (perf review #5).
    x = x_nchw.reshape(N, Cin, HW).astype(jnp.bfloat16)

    w1m = _pack_conv3x3_weight(params["w1"])          # (9, P,  Cin)
    w2m = _pack_conv3x3_weight(params["w2"])          # (9, C2, P)
    w3m = _pack_conv3x3_weight(params["w3"])          # (9, P,  C2)
    s1, b1 = _fold_bn(params["bn1"])
    s2, b2 = _fold_bn(params["bn2"])
    s3, b3 = _fold_bn(params["bn3"])

    if "wd" in params:
        wdm = params["wd"].T.astype(jnp.bfloat16)     # (C2, Cin) true 1x1 conv weight
        sd, bd = _fold_bn(params["bnd"])
    else:
        # Identity residual (module only type-checks when Cin == planes*2 in this branch).
        wdm = jnp.eye(C2, Cin, dtype=jnp.bfloat16)
        sd = jnp.ones((C2, 1), jnp.float32)
        bd = jnp.zeros((C2, 1), jnp.float32)

    fc1w = params["fc1_w"].T.astype(jnp.float32)      # (Cr, C2)  tiny -> keep f32
    fc1b = params["fc1_b"].reshape(-1, 1).astype(jnp.float32)
    fc2w = params["fc2_w"].T.astype(jnp.float32)      # (C2, Cr)
    fc2b = params["fc2_b"].reshape(-1, 1).astype(jnp.float32)

    # Column-validity masks for the kx=0 / kx=2 taps (1 = in-bounds, 0 = would wrap a row).
    colw = jnp.arange(HW, dtype=jnp.int32) % W
    mask_l = (colw >= 1).astype(jnp.float32).reshape(1, HW)
    mask_r = (colw <= W - 2).astype(jnp.float32).reshape(1, HW)

    kern = functools.partial(_se_conv_block_kernel, H=H, W=W)
    rep2 = lambda n: (0, 0)     # constant block index -> resident in VMEM across the grid
    rep3 = lambda n: (0, 0, 0)

    out, att = pl.pallas_call(
        kern,
        out_shape=(jax.ShapeDtypeStruct((N, P, HW), jnp.float32),
                   jax.ShapeDtypeStruct((N, C2, 1), jnp.float32)),
        grid=(N // bt,),
        in_specs=[
            pl.BlockSpec((bt, Cin, HW), lambda n: (n, 0, 0)),
            pl.BlockSpec((1, HW), rep2),                      # mask_l
            pl.BlockSpec((1, HW), rep2),                      # mask_r
            pl.BlockSpec((9, P, Cin), rep3), pl.BlockSpec((P, 1), rep2), pl.BlockSpec((P, 1), rep2),
            pl.BlockSpec((9, C2, P), rep3), pl.BlockSpec((C2, 1), rep2), pl.BlockSpec((C2, 1), rep2),
            pl.BlockSpec((C2, Cin), rep2), pl.BlockSpec((C2, 1), rep2), pl.BlockSpec((C2, 1), rep2),
            pl.BlockSpec((Cr, C2), rep2), pl.BlockSpec((Cr, 1), rep2),
            pl.BlockSpec((C2, Cr), rep2), pl.BlockSpec((C2, 1), rep2),
            pl.BlockSpec((9, P, C2), rep3), pl.BlockSpec((P, 1), rep2), pl.BlockSpec((P, 1), rep2),
        ],
        out_specs=(pl.BlockSpec((bt, P, HW), lambda n: (n, 0, 0)),
                   pl.BlockSpec((bt, C2, 1), lambda n: (n, 0, 0))),
        scratch_shapes=[
            pltpu.VMEM((Cmax, PADL + HW + PADL), jnp.bfloat16),   # zero-halo staging buffer
        ],
        compiler_params=pltpu.CompilerParams(
            dimension_semantics=("parallel",),                    # batch tiles across TCs
            vmem_limit_bytes=_vmem_limit_bytes(),
        ),
    )(x, mask_l, mask_r,
      w1m, s1, b1, w2m, s2, b2, wdm, sd, bd,
      fc1w, fc1b, fc2w, fc2b, w3m, s3, b3)

    return out.reshape(N, P, H, W), att.reshape(N, C2, 1, 1)


# ----------------------------------------------------------------------------
# Plain-JAX reference (correctness check only, pure f32)
# ----------------------------------------------------------------------------
def reference_forward(x_nchw, params):
    x = jnp.transpose(x_nchw, (0, 2, 3, 1))

    def conv(xx, w):
        return jax.lax.conv_general_dilated(
            xx, w, (1, 1), "SAME", dimension_numbers=("NHWC", "HWIO", "NHWC"))

    def bn(xx, p):
        g, b, m, v = p
        return (xx - m) / jnp.sqrt(v + 1e-5) * g + b

    out = jax.nn.relu(bn(conv(x, params["w1"]), params["bn1"]))
    out = bn(conv(out, params["w2"]), params["bn2"])
    if "wd" in params:
        res = bn(conv(x, params["wd"][None, None, :, :]), params["bnd"])   # 1x1 conv
    else:
        res = x
    avg = out.mean(axis=(1, 2))
    mx = out.max(axis=(1, 2))

    def se(v):
        h = jax.nn.relu(v @ params["fc1_w"] + params["fc1_b"])
        return jax.nn.sigmoid(h @ params["fc2_w"] + params["fc2_b"])

    att = se(avg) + se(mx)
    o = jax.nn.relu(out * att[:, None, None, :] + res)
    o = jax.nn.relu(bn(conv(o, params["w3"]), params["bn3"]))
    return jnp.transpose(o, (0, 3, 1, 2)), att[:, :, None, None]


# ----------------------------------------------------------------------------
# Deterministic parameter initialization (synthetic weights, no checkpoint)
# ----------------------------------------------------------------------------
def init_params(key, inplanes, planes):
    c2 = planes * 2
    cr = int(round(planes / 2))
    keys = jax.random.split(key, 12)

    def bn_params(k, c):
        k1, k2, k3, k4 = jax.random.split(k, 4)
        gamma = 1.0 + 0.1 * jax.random.normal(k1, (c,), jnp.float32)
        beta = 0.1 * jax.random.normal(k2, (c,), jnp.float32)
        mean = 0.1 * jax.random.normal(k3, (c,), jnp.float32)
        var = 0.5 + 0.1 * jnp.abs(jax.random.normal(k4, (c,), jnp.float32))
        return (gamma, beta, mean, var)

    params = {
        "w1": 0.1 * jax.random.normal(keys[0], (3, 3, inplanes, planes), jnp.float32),
        "bn1": bn_params(keys[1], planes),
        "w2": 0.1 * jax.random.normal(keys[2], (3, 3, planes, c2), jnp.float32),
        "bn2": bn_params(keys[3], c2),
        "w3": 0.1 * jax.random.normal(keys[4], (3, 3, c2, planes), jnp.float32),
        "bn3": bn_params(keys[5], planes),
        "fc1_w": 0.2 * jax.random.normal(keys[6], (c2, cr), jnp.float32),
        "fc1_b": 0.1 * jax.random.normal(keys[7], (cr,), jnp.float32),
        "fc2_w": 0.2 * jax.random.normal(keys[8], (cr, c2), jnp.float32),
        "fc2_b": 0.1 * jax.random.normal(keys[9], (c2,), jnp.float32),
    }
    if inplanes != planes:
        # Dedicated 1x1 downchannel conv weight, stored as (Cin, Cout).
        params["wd"] = 0.1 * jax.random.normal(keys[10], (inplanes, c2), jnp.float32)
        params["bnd"] = bn_params(keys[11], c2)
    return params


if __name__ == "__main__":
    N, inplanes, planes, H, W = 2, 8, 4, 16, 16   # inplanes != planes -> downchannel path

    key = jax.random.PRNGKey(0)
    kx, kp = jax.random.split(key)
    x = jax.random.normal(kx, (N, inplanes, H, W), jnp.float32)
    params = init_params(kp, inplanes, planes)

    fwd = jax.jit(se_conv_block_forward)
    out, att_weight = fwd(x, params)
    jax.block_until_ready(out)
    jax.block_until_ready(att_weight)

    assert out.shape == (N, planes, H, W)
    assert att_weight.shape == (N, planes * 2, 1, 1)

    ref_out, ref_att = reference_forward(x, params)
    # Tolerance accounts for bf16 MXU inputs (f32 accumulation) vs the pure-f32 reference.
    assert jnp.allclose(out, ref_out, rtol=3e-2, atol=3e-2), "output mismatch"
    assert jnp.allclose(att_weight, ref_att, rtol=3e-2, atol=3e-2), "attention mismatch"

    print("KERNEL_OK")
</pallas_src>

<mosaic_0001>
module attributes {stable_mosaic.version = 11 : i64} {
  func.func @_se_conv_block_kernel(%arg0: i32, %arg1: memref<2x8x256xbf16, #tpu.memory_space<vmem>>, %arg2: memref<1x256xf32, #tpu.memory_space<vmem>>, %arg3: memref<1x256xf32, #tpu.memory_space<vmem>>, %arg4: memref<9x4x8xbf16, #tpu.memory_space<vmem>>, %arg5: memref<4x1xf32, #tpu.memory_space<vmem>>, %arg6: memref<4x1xf32, #tpu.memory_space<vmem>>, %arg7: memref<9x8x4xbf16, #tpu.memory_space<vmem>>, %arg8: memref<8x1xf32, #tpu.memory_space<vmem>>, %arg9: memref<8x1xf32, #tpu.memory_space<vmem>>, %arg10: memref<8x8xbf16, #tpu.memory_space<vmem>>, %arg11: memref<8x1xf32, #tpu.memory_space<vmem>>, %arg12: memref<8x1xf32, #tpu.memory_space<vmem>>, %arg13: memref<2x8xf32, #tpu.memory_space<vmem>>, %arg14: memref<2x1xf32, #tpu.memory_space<vmem>>, %arg15: memref<8x2xf32, #tpu.memory_space<vmem>>, %arg16: memref<8x1xf32, #tpu.memory_space<vmem>>, %arg17: memref<9x4x8xbf16, #tpu.memory_space<vmem>>, %arg18: memref<4x1xf32, #tpu.memory_space<vmem>>, %arg19: memref<4x1xf32, #tpu.memory_space<vmem>>, %arg20: memref<2x4x256xf32, #tpu.memory_space<vmem>>, %arg21: memref<2x8x1xf32, #tpu.memory_space<vmem>>, %arg22: memref<8x512xbf16, #tpu.memory_space<vmem>>) attributes {dimension_semantics = [#tpu.dimension_semantics<parallel>], iteration_bounds = array<i64: 1>, scalar_prefetch = 0 : i64, scratch_operands = 1 : i64, tpu.core_type = #tpu.core_type<tc>, window_params = [{transform_indices = @transform_0, window_bounds = array<i64: 2, 8, 256>}, {pipeline_mode = #tpu.pipeline_mode<synchronous>, transform_indices = @transform_1, window_bounds = array<i64: 1, 256>}, {pipeline_mode = #tpu.pipeline_mode<synchronous>, transform_indices = @transform_2, window_bounds = array<i64: 1, 256>}, {pipeline_mode = #tpu.pipeline_mode<synchronous>, transform_indices = @transform_3, window_bounds = array<i64: 9, 4, 8>}, {pipeline_mode = #tpu.pipeline_mode<synchronous>, transform_indices = @transform_4, window_bounds = array<i64: 4, 1>}, {pipeline_mode = #tpu.pipeline_mode<synchronous>, transform_indices = @transform_5, window_bounds = array<i64: 4, 1>}, {pipeline_mode = #tpu.pipeline_mode<synchronous>, transform_indices = @transform_6, window_bounds = array<i64: 9, 8, 4>}, {pipeline_mode = #tpu.pipeline_mode<synchronous>, transform_indices = @transform_7, window_bounds = array<i64: 8, 1>}, {pipeline_mode = #tpu.pipeline_mode<synchronous>, transform_indices = @transform_8, window_bounds = array<i64: 8, 1>}, {pipeline_mode = #tpu.pipeline_mode<synchronous>, transform_indices = @transform_9, window_bounds = array<i64: 8, 8>}, {pipeline_mode = #tpu.pipeline_mode<synchronous>, transform_indices = @transform_10, window_bounds = array<i64: 8, 1>}, {pipeline_mode = #tpu.pipeline_mode<synchronous>, transform_indices = @transform_11, window_bounds = array<i64: 8, 1>}, {pipeline_mode = #tpu.pipeline_mode<synchronous>, transform_indices = @transform_12, window_bounds = array<i64: 2, 8>}, {pipeline_mode = #tpu.pipeline_mode<synchronous>, transform_indices = @transform_13, window_bounds = array<i64: 2, 1>}, {pipeline_mode = #tpu.pipeline_mode<synchronous>, transform_indices = @transform_14, window_bounds = array<i64: 8, 2>}, {pipeline_mode = #tpu.pipeline_mode<synchronous>, transform_indices = @transform_15, window_bounds = array<i64: 8, 1>}, {pipeline_mode = #tpu.pipeline_mode<synchronous>, transform_indices = @transform_16, window_bounds = array<i64: 9, 4, 8>}, {pipeline_mode = #tpu.pipeline_mode<synchronous>, transform_indices = @transform_17, window_bounds = array<i64: 4, 1>}, {pipeline_mode = #tpu.pipeline_mode<synchronous>, transform_indices = @transform_18, window_bounds = array<i64: 4, 1>}, {transform_indices = @transform_19, window_bounds = array<i64: 2, 4, 256>}, {transform_indices = @transform_20, window_bounds = array<i64: 2, 8, 1>}]} {
    %cst = arith.constant 0.000000e+00 : bf16
    %0 = vector.broadcast %cst : bf16 to vector<8x128xbf16>
    %c0 = arith.constant 0 : index
    %c0_0 = arith.constant 0 : index
    %1 = vector.load %arg22[%c0, %c0_0] : memref<8x512xbf16, #tpu.memory_space<vmem>>, vector<8x128xbf16>
    tpu.vector_store %arg22[%c0, %c0_0], %0 {strides = array<i32>} : memref<8x512xbf16, #tpu.memory_space<vmem>>, vector<8x128xbf16>,
    %c0_1 = arith.constant 0 : index
    %c384 = arith.constant 384 : index
    %2 = vector.load %arg22[%c0_1, %c384] : memref<8x512xbf16, #tpu.memory_space<vmem>>, vector<8x128xbf16>
    tpu.vector_store %arg22[%c0_1, %c384], %0 {strides = array<i32>} : memref<8x512xbf16, #tpu.memory_space<vmem>>, vector<8x128xbf16>,
    %c0_2 = arith.constant 0 : index
    %c0_3 = arith.constant 0 : index
    %3 = vector.load %arg2[%c0_2, %c0_3] : memref<1x256xf32, #tpu.memory_space<vmem>>, vector<1x256xf32>
    %cst_4 = arith.constant 5.000000e-01 : f32
    %4 = vector.broadcast %cst_4 : f32 to vector<1x256xf32>
    %5 = arith.cmpf ogt, %3, %4 : vector<1x256xf32>
    %c0_5 = arith.constant 0 : index
    %c0_6 = arith.constant 0 : index
    %6 = vector.load %arg3[%c0_5, %c0_6] : memref<1x256xf32, #tpu.memory_space<vmem>>, vector<1x256xf32>
    %cst_7 = arith.constant 5.000000e-01 : f32
    %7 = vector.broadcast %cst_7 : f32 to vector<1x256xf32>
    %8 = arith.cmpf ogt, %6, %7 : vector<1x256xf32>
    %c0_8 = arith.constant 0 : index
    %c0_9 = arith.constant 0 : index
    %9 = vector.load %arg5[%c0_8, %c0_9] : memref<4x1xf32, #tpu.memory_space<vmem>>, vector<4x1xf32>
    %c0_10 = arith.constant 0 : index
    %c0_11 = arith.constant 0 : index
    %10 = vector.load %arg6[%c0_10, %c0_11] : memref<4x1xf32, #tpu.memory_space<vmem>>, vector<4x1xf32>
    %c0_12 = arith.constant 0 : index
    %c0_13 = arith.constant 0 : index
    %11 = vector.load %arg8[%c0_12, %c0_13] : memref<8x1xf32, #tpu.memory_space<vmem>>, vector<8x1xf32>
    %c0_14 = arith.constant 0 : index
    %c0_15 = arith.constant 0 : index
    %12 = vector.load %arg9[%c0_14, %c0_15] : memref<8x1xf32, #tpu.memory_space<vmem>>, vector<8x1xf32>
    %c0_16 = arith.constant 0 : index
    %c0_17 = arith.constant 0 : index
    %13 = vector.load %arg18[%c0_16, %c0_17] : memref<4x1xf32, #tpu.memory_space<vmem>>, vector<4x1xf32>
    %c0_18 = arith.constant 0 : index
    %c0_19 = arith.constant 0 : index
    %14 = vector.load %arg19[%c0_18, %c0_19] : memref<4x1xf32, #tpu.memory_space<vmem>>, vector<4x1xf32>
    %c0_20 = arith.constant 0 : index
    %c0_21 = arith.constant 0 : index
    %15 = vector.load %arg11[%c0_20, %c0_21] : memref<8x1xf32, #tpu.memory_space<vmem>>, vector<8x1xf32>
    %c0_22 = arith.constant 0 : index
    %c0_23 = arith.constant 0 : index
    %16 = vector.load %arg12[%c0_22, %c0_23] : memref<8x1xf32, #tpu.memory_space<vmem>>, vector<8x1xf32>
    %c0_24 = arith.constant 0 : index
    %c0_25 = arith.constant 0 : index
    %17 = vector.load %arg10[%c0_24, %c0_25] : memref<8x8xbf16, #tpu.memory_space<vmem>>, vector<8x8xbf16>
    %c0_26 = arith.constant 0 : index
    %c0_27 = arith.constant 0 : index
    %18 = vector.load %arg13[%c0_26, %c0_27] : memref<2x8xf32, #tpu.memory_space<vmem>>, vector<2x8xf32>
    %c0_28 = arith.constant 0 : index
    %c0_29 = arith.constant 0 : index
    %19 = vector.load %arg14[%c0_28, %c0_29] : memref<2x1xf32, #tpu.memory_space<vmem>>, vector<2x1xf32>
    %c0_30 = arith.constant 0 : index
    %c0_31 = arith.constant 0 : index
    %20 = vector.load %arg15[%c0_30, %c0_31] : memref<8x2xf32, #tpu.memory_space<vmem>>, vector<8x2xf32>
    %c0_32 = arith.constant 0 : index
    %c0_33 = arith.constant 0 : index
    %21 = vector.load %arg16[%c0_32, %c0_33] : memref<8x1xf32, #tpu.memory_space<vmem>>, vector<8x1xf32>
    %c0_i32 = arith.constant 0 : i32
    %c2_i32 = arith.constant 2 : i32
    %22 = arith.addi %c0_i32, %c2_i32 : i32
    %c1_i32 = arith.constant 1 : i32
    scf.for %arg23 = %c0_i32 to %22 step %c1_i32  : i32 {
      %c1_i32_35 = arith.constant 1 : i32
      %23 = arith.muli %arg23, %c1_i32_35 : i32
      %c0_i32_36 = arith.constant 0 : i32
      %24 = arith.addi %c0_i32_36, %23 : i32
      %25 = arith.index_cast %24 : i32 to index
      %c0_37 = arith.constant 0 : index
      %c0_38 = arith.constant 0 : index
      %26 = vector.load %arg1[%25, %c0_37, %c0_38] : memref<2x8x256xbf16, #tpu.memory_space<vmem>>, vector<1x8x256xbf16>
      %27 = vector.shape_cast %26 : vector<1x8x256xbf16> to vector<8x256xbf16>
      %c0_39 = arith.constant 0 : index
      %c128 = arith.constant 128 : index
      %28 = vector.load %arg22[%c0_39, %c128] : memref<8x512xbf16, #tpu.memory_space<vmem>>, vector<8x256xbf16>
      tpu.vector_store %arg22[%c0_39, %c128], %27 {strides = array<i32>} : memref<8x512xbf16, #tpu.memory_space<vmem>>, vector<8x256xbf16>,
      %29 = vector.shape_cast %5 : vector<1x256xi1> to vector<1x256xi1>
      %30 = vector.broadcast %29 : vector<1x256xi1> to vector<8x256xi1>
      %31 = vector.shape_cast %8 : vector<1x256xi1> to vector<1x256xi1>
      %32 = vector.broadcast %31 : vector<1x256xi1> to vector<8x256xi1>
      %c0_40 = arith.constant 0 : index
      %c111 = arith.constant 111 : index
      %33 = vector.load %arg22[%c0_40, %c111] : memref<8x512xbf16, #tpu.memory_space<vmem>>, vector<8x256xbf16>
      %c0_i32_41 = arith.constant 0 : i32
      %34 = arith.sitofp %c0_i32_41 : i32 to bf16
      %35 = vector.broadcast %34 : bf16 to vector<8x256xbf16>
      %36 = arith.select %30, %33, %35 : vector<8x256xi1>, vector<8x256xbf16>
      %c0_42 = arith.constant 0 : index
      %c0_43 = arith.constant 0 : index
      %c0_44 = arith.constant 0 : index
      %37 = vector.load %arg4[%c0_42, %c0_43, %c0_44] : memref<9x4x8xbf16, #tpu.memory_space<vmem>>, vector<1x4x8xbf16>
      %38 = vector.shape_cast %37 : vector<1x4x8xbf16> to vector<4x8xbf16>
      %cst_45 = arith.constant dense<0.000000e+00> : vector<4x256xf32>
      %39 = tpu.matmul %38, %36, %cst_45 {dimension_numbers = #tpu.dot_dimension_numbers<[1], [0], [0], [1], [0, 0, 1, 1], [], []>} : vector<4x8xbf16>, vector<8x256xbf16>, vector<4x256xf32> -> vector<4x256xf32>
      %c0_46 = arith.constant 0 : index
      %c112 = arith.constant 112 : index
      %40 = vector.load %arg22[%c0_46, %c112] : memref<8x512xbf16, #tpu.memory_space<vmem>>, vector<8x256xbf16>
      %c1 = arith.constant 1 : index
      %c0_47 = arith.constant 0 : index
      %c0_48 = arith.constant 0 : index
      %41 = vector.load %arg4[%c1, %c0_47, %c0_48] : memref<9x4x8xbf16, #tpu.memory_space<vmem>>, vector<1x4x8xbf16>
      %42 = vector.shape_cast %41 : vector<1x4x8xbf16> to vector<4x8xbf16>
      %cst_49 = arith.constant dense<0.000000e+00> : vector<4x256xf32>
      %43 = tpu.matmul %42, %40, %cst_49 {dimension_numbers = #tpu.dot_dimension_numbers<[1], [0], [0], [1], [0, 0, 1, 1], [], []>} : vector<4x8xbf16>, vector<8x256xbf16>, vector<4x256xf32> -> vector<4x256xf32>
      %44 = arith.addf %39, %43 : vector<4x256xf32>
      %c0_50 = arith.constant 0 : index
      %c113 = arith.constant 113 : index
      %45 = vector.load %arg22[%c0_50, %c113] : memref<8x512xbf16, #tpu.memory_space<vmem>>, vector<8x256xbf16>
      %c0_i32_51 = arith.constant 0 : i32
      %46 = arith.sitofp %c0_i32_51 : i32 to bf16
      %47 = vector.broadcast %46 : bf16 to vector<8x256xbf16>
      %48 = arith.select %32, %45, %47 : vector<8x256xi1>, vector<8x256xbf16>
      %c2 = arith.constant 2 : index
      %c0_52 = arith.constant 0 : index
      %c0_53 = arith.constant 0 : index
      %49 = vector.load %arg4[%c2, %c0_52, %c0_53] : memref<9x4x8xbf16, #tpu.memory_space<vmem>>, vector<1x4x8xbf16>
      %50 = vector.shape_cast %49 : vector<1x4x8xbf16> to vector<4x8xbf16>
      %cst_54 = arith.constant dense<0.000000e+00> : vector<4x256xf32>
      %51 = tpu.matmul %50, %48, %cst_54 {dimension_numbers = #tpu.dot_dimension_numbers<[1], [0], [0], [1], [0, 0, 1, 1], [], []>} : vector<4x8xbf16>, vector<8x256xbf16>, vector<4x256xf32> -> vector<4x256xf32>
      %52 = arith.addf %44, %51 : vector<4x256xf32>
      %c0_55 = arith.constant 0 : index
      %c127 = arith.constant 127 : index
      %53 = vector.load %arg22[%c0_55, %c127] : memref<8x512xbf16, #tpu.memory_space<vmem>>, vector<8x256xbf16>
      %c0_i32_56 = arith.constant 0 : i32
      %54 = arith.sitofp %c0_i32_56 : i32 to bf16
      %55 = vector.broadcast %54 : bf16 to vector<8x256xbf16>
      %56 = arith.select %30, %53, %55 : vector<8x256xi1>, vector<8x256xbf16>
      %c3 = arith.constant 3 : index
      %c0_57 = arith.constant 0 : index
      %c0_58 = arith.constant 0 : index
      %57 = vector.load %arg4[%c3, %c0_57, %c0_58] : memref<9x4x8xbf16, #tpu.memory_space<vmem>>, vector<1x4x8xbf16>
      %58 = vector.shape_cast %57 : vector<1x4x8xbf16> to vector<4x8xbf16>
      %cst_59 = arith.constant dense<0.000000e+00> : vector<4x256xf32>
      %59 = tpu.matmul %58, %56, %cst_59 {dimension_numbers = #tpu.dot_dimension_numbers<[1], [0], [0], [1], [0, 0, 1, 1], [], []>} : vector<4x8xbf16>, vector<8x256xbf16>, vector<4x256xf32> -> vector<4x256xf32>
      %60 = arith.addf %52, %59 : vector<4x256xf32>
      %c0_60 = arith.constant 0 : index
      %c128_61 = arith.constant 128 : index
      %61 = vector.load %arg22[%c0_60, %c128_61] : memref<8x512xbf16, #tpu.memory_space<vmem>>, vector<8x256xbf16>
      %c4 = arith.constant 4 : index
      %c0_62 = arith.constant 0 : index
      %c0_63 = arith.constant 0 : index
      %62 = vector.load %arg4[%c4, %c0_62, %c0_63] : memref<9x4x8xbf16, #tpu.memory_space<vmem>>, vector<1x4x8xbf16>
      %63 = vector.shape_cast %62 : vector<1x4x8xbf16> to vector<4x8xbf16>
      %cst_64 = arith.constant dense<0.000000e+00> : vector<4x256xf32>
      %64 = tpu.matmul %63, %61, %cst_64 {dimension_numbers = #tpu.dot_dimension_numbers<[1], [0], [0], [1], [0, 0, 1, 1], [], []>} : vector<4x8xbf16>, vector<8x256xbf16>, vector<4x256xf32> -> vector<4x256xf32>
      %65 = arith.addf %60, %64 : vector<4x256xf32>
      %c0_65 = arith.constant 0 : index
      %c129 = arith.constant 129 : index
      %66 = vector.load %arg22[%c0_65, %c129] : memref<8x512xbf16, #tpu.memory_space<vmem>>, vector<8x256xbf16>
      %c0_i32_66 = arith.constant 0 : i32
      %67 = arith.sitofp %c0_i32_66 : i32 to bf16
      %68 = vector.broadcast %67 : bf16 to vector<8x256xbf16>
      %69 = arith.select %32, %66, %68 : vector<8x256xi1>, vector<8x256xbf16>
      %c5 = arith.constant 5 : index
      %c0_67 = arith.constant 0 : index
      %c0_68 = arith.constant 0 : index
      %70 = vector.load %arg4[%c5, %c0_67, %c0_68] : memref<9x4x8xbf16, #tpu.memory_space<vmem>>, vector<1x4x8xbf16>
      %71 = vector.shape_cast %70 : vector<1x4x8xbf16> to vector<4x8xbf16>
      %cst_69 = arith.constant dense<0.000000e+00> : vector<4x256xf32>
      %72 = tpu.matmul %71, %69, %cst_69 {dimension_numbers = #tpu.dot_dimension_numbers<[1], [0], [0], [1], [0, 0, 1, 1], [], []>} : vector<4x8xbf16>, vector<8x256xbf16>, vector<4x256xf32> -> vector<4x256xf32>
      %73 = arith.addf %65, %72 : vector<4x256xf32>
      %c0_70 = arith.constant 0 : index
      %c143 = arith.constant 143 : index
      %74 = vector.load %arg22[%c0_70, %c143] : memref<8x512xbf16, #tpu.memory_space<vmem>>, vector<8x256xbf16>
      %c0_i32_71 = arith.constant 0 : i32
      %75 = arith.sitofp %c0_i32_71 : i32 to bf16
      %76 = vector.broadcast %75 : bf16 to vector<8x256xbf16>
      %77 = arith.select %30, %74, %76 : vector<8x256xi1>, vector<8x256xbf16>
      %c6 = arith.constant 6 : index
      %c0_72 = arith.constant 0 : index
      %c0_73 = arith.constant 0 : index
      %78 = vector.load %arg4[%c6, %c0_72, %c0_73] : memref<9x4x8xbf16, #tpu.memory_space<vmem>>, vector<1x4x8xbf16>
      %79 = vector.shape_cast %78 : vector<1x4x8xbf16> to vector<4x8xbf16>
      %cst_74 = arith.constant dense<0.000000e+00> : vector<4x256xf32>
      %80 = tpu.matmul %79, %77, %cst_74 {dimension_numbers = #tpu.dot_dimension_numbers<[1], [0], [0], [1], [0, 0, 1, 1], [], []>} : vector<4x8xbf16>, vector<8x256xbf16>, vector<4x256xf32> -> vector<4x256xf32>
      %81 = arith.addf %73, %80 : vector<4x256xf32>
      %c0_75 = arith.constant 0 : index
      %c144 = arith.constant 144 : index
      %82 = vector.load %arg22[%c0_75, %c144] : memref<8x512xbf16, #tpu.memory_space<vmem>>, vector<8x256xbf16>
      %c7 = arith.constant 7 : index
      %c0_76 = arith.constant 0 : index
      %c0_77 = arith.constant 0 : index
      %83 = vector.load %arg4[%c7, %c0_76, %c0_77] : memref<9x4x8xbf16, #tpu.memory_space<vmem>>, vector<1x4x8xbf16>
      %84 = vector.shape_cast %83 : vector<1x4x8xbf16> to vector<4x8xbf16>
      %cst_78 = arith.constant dense<0.000000e+00> : vector<4x256xf32>
      %85 = tpu.matmul %84, %82, %cst_78 {dimension_numbers = #tpu.dot_dimension_numbers<[1], [0], [0], [1], [0, 0, 1, 1], [], []>} : vector<4x8xbf16>, vector<8x256xbf16>, vector<4x256xf32> -> vector<4x256xf32>
      %86 = arith.addf %81, %85 : vector<4x256xf32>
      %c0_79 = arith.constant 0 : index
      %c145 = arith.constant 145 : index
      %87 = vector.load %arg22[%c0_79, %c145] : memref<8x512xbf16, #tpu.memory_space<vmem>>, vector<8x256xbf16>
      %c0_i32_80 = arith.constant 0 : i32
      %88 = arith.sitofp %c0_i32_80 : i32 to bf16
      %89 = vector.broadcast %88 : bf16 to vector<8x256xbf16>
      %90 = arith.select %32, %87, %89 : vector<8x256xi1>, vector<8x256xbf16>
      %c8 = arith.constant 8 : index
      %c0_81 = arith.constant 0 : index
      %c0_82 = arith.constant 0 : index
      %91 = vector.load %arg4[%c8, %c0_81, %c0_82] : memref<9x4x8xbf16, #tpu.memory_space<vmem>>, vector<1x4x8xbf16>
      %92 = vector.shape_cast %91 : vector<1x4x8xbf16> to vector<4x8xbf16>
      %cst_83 = arith.constant dense<0.000000e+00> : vector<4x256xf32>
      %93 = tpu.matmul %92, %90, %cst_83 {dimension_numbers = #tpu.dot_dimension_numbers<[1], [0], [0], [1], [0, 0, 1, 1], [], []>} : vector<4x8xbf16>, vector<8x256xbf16>, vector<4x256xf32> -> vector<4x256xf32>
      %94 = arith.addf %86, %93 : vector<4x256xf32>
      %95 = vector.broadcast %9 : vector<4x1xf32> to vector<4x256xf32>
      %96 = arith.mulf %94, %95 : vector<4x256xf32>
      %97 = vector.broadcast %10 : vector<4x1xf32> to vector<4x256xf32>
      %98 = arith.addf %96, %97 : vector<4x256xf32>
      %cst_84 = arith.constant 0.000000e+00 : f32
      %99 = vector.broadcast %cst_84 : f32 to vector<4x256xf32>
      %100 = arith.maximumf %98, %99 : vector<4x256xf32>
      %101 = arith.truncf %100 : vector<4x256xf32> to vector<4x256xbf16>
      %c0_85 = arith.constant 0 : index
      %c128_86 = arith.constant 128 : index
      %102 = vector.load %arg22[%c0_85, %c128_86] : memref<8x512xbf16, #tpu.memory_space<vmem>>, vector<4x256xbf16>
      tpu.vector_store %arg22[%c0_85, %c128_86], %101 {strides = array<i32>} : memref<8x512xbf16, #tpu.memory_space<vmem>>, vector<4x256xbf16>,
      %103 = vector.shape_cast %5 : vector<1x256xi1> to vector<1x256xi1>
      %104 = vector.broadcast %103 : vector<1x256xi1> to vector<4x256xi1>
      %105 = vector.shape_cast %8 : vector<1x256xi1> to vector<1x256xi1>
      %106 = vector.broadcast %105 : vector<1x256xi1> to vector<4x256xi1>
      %c0_87 = arith.constant 0 : index
      %c111_88 = arith.constant 111 : index
      %107 = vector.load %arg22[%c0_87, %c111_88] : memref<8x512xbf16, #tpu.memory_space<vmem>>, vector<4x256xbf16>
      %c0_i32_89 = arith.constant 0 : i32
      %108 = arith.sitofp %c0_i32_89 : i32 to bf16
      %109 = vector.broadcast %108 : bf16 to vector<4x256xbf16>
      %110 = arith.select %104, %107, %109 : vector<4x256xi1>, vector<4x256xbf16>
      %c0_90 = arith.constant 0 : index
      %c0_91 = arith.constant 0 : index
      %c0_92 = arith.constant 0 : index
      %111 = vector.load %arg7[%c0_90, %c0_91, %c0_92] : memref<9x8x4xbf16, #tpu.memory_space<vmem>>, vector<1x8x4xbf16>
      %112 = vector.shape_cast %111 : vector<1x8x4xbf16> to vector<8x4xbf16>
      %cst_93 = arith.constant dense<0.000000e+00> : vector<8x256xf32>
      %113 = tpu.matmul %112, %110, %cst_93 {dimension_numbers = #tpu.dot_dimension_numbers<[1], [0], [0], [1], [0, 0, 1, 1], [], []>} : vector<8x4xbf16>, vector<4x256xbf16>, vector<8x256xf32> -> vector<8x256xf32>
      %c0_94 = arith.constant 0 : index
      %c112_95 = arith.constant 112 : index
      %114 = vector.load %arg22[%c0_94, %c112_95] : memref<8x512xbf16, #tpu.memory_space<vmem>>, vector<4x256xbf16>
      %c1_96 = arith.constant 1 : index
      %c0_97 = arith.constant 0 : index
      %c0_98 = arith.constant 0 : index
      %115 = vector.load %arg7[%c1_96, %c0_97, %c0_98] : memref<9x8x4xbf16, #tpu.memory_space<vmem>>, vector<1x8x4xbf16>
      %116 = vector.shape_cast %115 : vector<1x8x4xbf16> to vector<8x4xbf16>
      %cst_99 = arith.constant dense<0.000000e+00> : vector<8x256xf32>
      %117 = tpu.matmul %116, %114, %cst_99 {dimension_numbers = #tpu.dot_dimension_numbers<[1], [0], [0], [1], [0, 0, 1, 1], [], []>} : vector<8x4xbf16>, vector<4x256xbf16>, vector<8x256xf32> -> vector<8x256xf32>
      %118 = arith.addf %113, %117 : vector<8x256xf32>
      %c0_100 = arith.constant 0 : index
      %c113_101 = arith.constant 113 : index
      %119 = vector.load %arg22[%c0_100, %c113_101] : memref<8x512xbf16, #tpu.memory_space<vmem>>, vector<4x256xbf16>
      %c0_i32_102 = arith.constant 0 : i32
      %120 = arith.sitofp %c0_i32_102 : i32 to bf16
      %121 = vector.broadcast %120 : bf16 to vector<4x256xbf16>
      %122 = arith.select %106, %119, %121 : vector<4x256xi1>, vector<4x256xbf16>
      %c2_103 = arith.constant 2 : index
      %c0_104 = arith.constant 0 : index
      %c0_105 = arith.constant 0 : index
      %123 = vector.load %arg7[%c2_103, %c0_104, %c0_105] : memref<9x8x4xbf16, #tpu.memory_space<vmem>>, vector<1x8x4xbf16>
      %124 = vector.shape_cast %123 : vector<1x8x4xbf16> to vector<8x4xbf16>
      %cst_106 = arith.constant dense<0.000000e+00> : vector<8x256xf32>
      %125 = tpu.matmul %124, %122, %cst_106 {dimension_numbers = #tpu.dot_dimension_numbers<[1], [0], [0], [1], [0, 0, 1, 1], [], []>} : vector<8x4xbf16>, vector<4x256xbf16>, vector<8x256xf32> -> vector<8x256xf32>
      %126 = arith.addf %118, %125 : vector<8x256xf32>
      %c0_107 = arith.constant 0 : index
      %c127_108 = arith.constant 127 : index
      %127 = vector.load %arg22[%c0_107, %c127_108] : memref<8x512xbf16, #tpu.memory_space<vmem>>, vector<4x256xbf16>
      %c0_i32_109 = arith.constant 0 : i32
      %128 = arith.sitofp %c0_i32_109 : i32 to bf16
      %129 = vector.broadcast %128 : bf16 to vector<4x256xbf16>
      %130 = arith.select %104, %127, %129 : vector<4x256xi1>, vector<4x256xbf16>
      %c3_110 = arith.constant 3 : index
      %c0_111 = arith.constant 0 : index
      %c0_112 = arith.constant 0 : index
      %131 = vector.load %arg7[%c3_110, %c0_111, %c0_112] : memref<9x8x4xbf16, #tpu.memory_space<vmem>>, vector<1x8x4xbf16>
      %132 = vector.shape_cast %131 : vector<1x8x4xbf16> to vector<8x4xbf16>
      %cst_113 = arith.constant dense<0.000000e+00> : vector<8x256xf32>
      %133 = tpu.matmul %132, %130, %cst_113 {dimension_numbers = #tpu.dot_dimension_numbers<[1], [0], [0], [1], [0, 0, 1, 1], [], []>} : vector<8x4xbf16>, vector<4x256xbf16>, vector<8x256xf32> -> vector<8x256xf32>
      %134 = arith.addf %126, %133 : vector<8x256xf32>
      %c0_114 = arith.constant 0 : index
      %c128_115 = arith.constant 128 : index
      %135 = vector.load %arg22[%c0_114, %c128_115] : memref<8x512xbf16, #tpu.memory_space<vmem>>, vector<4x256xbf16>
      %c4_116 = arith.constant 4 : index
      %c0_117 = arith.constant 0 : index
      %c0_118 = arith.constant 0 : index
      %136 = vector.load %arg7[%c4_116, %c0_117, %c0_118] : memref<9x8x4xbf16, #tpu.memory_space<vmem>>, vector<1x8x4xbf16>
      %137 = vector.shape_cast %136 : vector<1x8x4xbf16> to vector<8x4xbf16>
      %cst_119 = arith.constant dense<0.000000e+00> : vector<8x256xf32>
      %138 = tpu.matmul %137, %135, %cst_119 {dimension_numbers = #tpu.dot_dimension_numbers<[1], [0], [0], [1], [0, 0, 1, 1], [], []>} : vector<8x4xbf16>, vector<4x256xbf16>, vector<8x256xf32> -> vector<8x256xf32>
      %139 = arith.addf %134, %138 : vector<8x256xf32>
      %c0_120 = arith.constant 0 : index
      %c129_121 = arith.constant 129 : index
      %140 = vector.load %arg22[%c0_120, %c129_121] : memref<8x512xbf16, #tpu.memory_space<vmem>>, vector<4x256xbf16>
      %c0_i32_122 = arith.constant 0 : i32
      %141 = arith.sitofp %c0_i32_122 : i32 to bf16
      %142 = vector.broadcast %141 : bf16 to vector<4x256xbf16>
      %143 = arith.select %106, %140, %142 : vector<4x256xi1>, vector<4x256xbf16>
      %c5_123 = arith.constant 5 : index
      %c0_124 = arith.constant 0 : index
      %c0_125 = arith.constant 0 : index
      %144 = vector.load %arg7[%c5_123, %c0_124, %c0_125] : memref<9x8x4xbf16, #tpu.memory_space<vmem>>, vector<1x8x4xbf16>
      %145 = vector.shape_cast %144 : vector<1x8x4xbf16> to vector<8x4xbf16>
      %cst_126 = arith.constant dense<0.000000e+00> : vector<8x256xf32>
      %146 = tpu.matmul %145, %143, %cst_126 {dimension_numbers = #tpu.dot_dimension_numbers<[1], [0], [0], [1], [0, 0, 1, 1], [], []>} : vector<8x4xbf16>, vector<4x256xbf16>, vector<8x256xf32> -> vector<8x256xf32>
      %147 = arith.addf %139, %146 : vector<8x256xf32>
      %c0_127 = arith.constant 0 : index
      %c143_128 = arith.constant 143 : index
      %148 = vector.load %arg22[%c0_127, %c143_128] : memref<8x512xbf16, #tpu.memory_space<vmem>>, vector<4x256xbf16>
      %c0_i32_129 = arith.constant 0 : i32
      %149 = arith.sitofp %c0_i32_129 : i32 to bf16
      %150 = vector.broadcast %149 : bf16 to vector<4x256xbf16>
      %151 = arith.select %104, %148, %150 : vector<4x256xi1>, vector<4x256xbf16>
      %c6_130 = arith.constant 6 : index
      %c0_131 = arith.constant 0 : index
      %c0_132 = arith.constant 0 : index
      %152 = vector.load %arg7[%c6_130, %c0_131, %c0_132] : memref<9x8x4xbf16, #tpu.memory_space<vmem>>, vector<1x8x4xbf16>
      %153 = vector.shape_cast %152 : vector<1x8x4xbf16> to vector<8x4xbf16>
      %cst_133 = arith.constant dense<0.000000e+00> : vector<8x256xf32>
      %154 = tpu.matmul %153, %151, %cst_133 {dimension_numbers = #tpu.dot_dimension_numbers<[1], [0], [0], [1], [0, 0, 1, 1], [], []>} : vector<8x4xbf16>, vector<4x256xbf16>, vector<8x256xf32> -> vector<8x256xf32>
      %155 = arith.addf %147, %154 : vector<8x256xf32>
      %c0_134 = arith.constant 0 : index
      %c144_135 = arith.constant 144 : index
      %156 = vector.load %arg22[%c0_134, %c144_135] : memref<8x512xbf16, #tpu.memory_space<vmem>>, vector<4x256xbf16>
      %c7_136 = arith.constant 7 : index
      %c0_137 = arith.constant 0 : index
      %c0_138 = arith.constant 0 : index
      %157 = vector.load %arg7[%c7_136, %c0_137, %c0_138] : memref<9x8x4xbf16, #tpu.memory_space<vmem>>, vector<1x8x4xbf16>
      %158 = vector.shape_cast %157 : vector<1x8x4xbf16> to vector<8x4xbf16>
      %cst_139 = arith.constant dense<0.000000e+00> : vector<8x256xf32>
      %159 = tpu.matmul %158, %156, %cst_139 {dimension_numbers = #tpu.dot_dimension_numbers<[1], [0], [0], [1], [0, 0, 1, 1], [], []>} : vector<8x4xbf16>, vector<4x256xbf16>, vector<8x256xf32> -> vector<8x256xf32>
      %160 = arith.addf %155, %159 : vector<8x256xf32>
      %c0_140 = arith.constant 0 : index
      %c145_141 = arith.constant 145 : index
      %161 = vector.load %arg22[%c0_140, %c145_141] : memref<8x512xbf16, #tpu.memory_space<vmem>>, vector<4x256xbf16>
      %c0_i32_142 = arith.constant 0 : i32
      %162 = arith.sitofp %c0_i32_142 : i32 to bf16
      %163 = vector.broadcast %162 : bf16 to vector<4x256xbf16>
      %164 = arith.select %106, %161, %163 : vector<4x256xi1>, vector<4x256xbf16>
      %c8_143 = arith.constant 8 : index
      %c0_144 = arith.constant 0 : index
      %c0_145 = arith.constant 0 : index
      %165 = vector.load %arg7[%c8_143, %c0_144, %c0_145] : memref<9x8x4xbf16, #tpu.memory_space<vmem>>, vector<1x8x4xbf16>
      %166 = vector.shape_cast %165 : vector<1x8x4xbf16> to vector<8x4xbf16>
      %cst_146 = arith.constant dense<0.000000e+00> : vector<8x256xf32>
      %167 = tpu.matmul %166, %164, %cst_146 {dimension_numbers = #tpu.dot_dimension_numbers<[1], [0], [0], [1], [0, 0, 1, 1], [], []>} : vector<8x4xbf16>, vector<4x256xbf16>, vector<8x256xf32> -> vector<8x256xf32>
      %168 = arith.addf %160, %167 : vector<8x256xf32>
      %169 = vector.broadcast %11 : vector<8x1xf32> to vector<8x256xf32>
      %170 = arith.mulf %168, %169 : vector<8x256xf32>
      %171 = vector.broadcast %12 : vector<8x1xf32> to vector<8x256xf32>
      %172 = arith.addf %170, %171 : vector<8x256xf32>
      %cst_147 = arith.constant dense<0.000000e+00> : vector<8x256xf32>
      %173 = tpu.matmul %17, %27, %cst_147 {dimension_numbers = #tpu.dot_dimension_numbers<[1], [0], [0], [1], [0, 0, 1, 1], [], []>} : vector<8x8xbf16>, vector<8x256xbf16>, vector<8x256xf32> -> vector<8x256xf32>
      %174 = vector.broadcast %15 : vector<8x1xf32> to vector<8x256xf32>
      %175 = arith.mulf %173, %174 : vector<8x256xf32>
      %176 = vector.broadcast %16 : vector<8x1xf32> to vector<8x256xf32>
      %177 = arith.addf %175, %176 : vector<8x256xf32>
      %cst_148 = arith.constant dense<0.000000e+00> : vector<8xf32>
      %178 = vector.multi_reduction <add>, %172, %cst_148 [1] : vector<8x256xf32> to vector<8xf32>
      %179 = vector.shape_cast %178 : vector<8xf32> to vector<8x1xf32>
      %cst_149 = arith.constant 2.560000e+02 : f32
      %180 = vector.broadcast %cst_149 : f32 to vector<8x1xf32>
      %181 = arith.divf %179, %180 : vector<8x1xf32>
      %cst_150 = arith.constant dense<0xFF800000> : vector<8xf32>
      %182 = vector.multi_reduction <maximumf>, %172, %cst_150 [1] : vector<8x256xf32> to vector<8xf32>
      %183 = vector.shape_cast %182 : vector<8xf32> to vector<8x1xf32>
      %184 = tpu.iota {dimensions = array<i32: 1>} : vector<8x2xi32>
      %c0_i32_151 = arith.constant 0 : i32
      %185 = vector.broadcast %c0_i32_151 : i32 to vector<8x2xi32>
      %186 = arith.cmpi eq, %184, %185 : vector<8x2xi32>
      %187 = vector.shape_cast %181 : vector<8x1xf32> to vector<8x1xf32>
      %188 = vector.broadcast %187 : vector<8x1xf32> to vector<8x2xf32>
      %189 = vector.shape_cast %183 : vector<8x1xf32> to vector<8x1xf32>
      %190 = vector.broadcast %189 : vector<8x1xf32> to vector<8x2xf32>
      %191 = arith.select %186, %188, %190 : vector<8x2xi1>, vector<8x2xf32>
      %cst_152 = arith.constant dense<0.000000e+00> : vector<2x2xf32>
      %192 = tpu.matmul %18, %191, %cst_152 {dimension_numbers = #tpu.dot_dimension_numbers<[1], [0], [0], [1], [0, 0, 1, 1], [], []>} : vector<2x8xf32>, vector<8x2xf32>, vector<2x2xf32> -> vector<2x2xf32>
      %193 = vector.broadcast %19 : vector<2x1xf32> to vector<2x2xf32>
      %194 = arith.addf %192, %193 : vector<2x2xf32>
      %cst_153 = arith.constant 0.000000e+00 : f32
      %195 = vector.broadcast %cst_153 : f32 to vector<2x2xf32>
      %196 = arith.maximumf %194, %195 : vector<2x2xf32>
      %cst_154 = arith.constant dense<0.000000e+00> : vector<8x2xf32>
      %197 = tpu.matmul %20, %196, %cst_154 {dimension_numbers = #tpu.dot_dimension_numbers<[1], [0], [0], [1], [0, 0, 1, 1], [], []>} : vector<8x2xf32>, vector<2x2xf32>, vector<8x2xf32> -> vector<8x2xf32>
      %198 = vector.broadcast %21 : vector<8x1xf32> to vector<8x2xf32>
      %199 = arith.addf %197, %198 : vector<8x2xf32>
      %200 = arith.negf %199 : vector<8x2xf32>
      %201 = math.exp %200 : vector<8x2xf32>
      %cst_155 = arith.constant 1.000000e+00 : f32
      %202 = vector.broadcast %cst_155 : f32 to vector<8x2xf32>
      %203 = arith.addf %202, %201 : vector<8x2xf32>
      %204 = arith.divf %202, %203 : vector<8x2xf32>
      %205 = vector.extract_strided_slice %204 {offsets = [0, 0], sizes = [8, 1], strides = [1, 1]} : vector<8x2xf32> to vector<8x1xf32>
      %206 = vector.extract_strided_slice %204 {offsets = [0, 1], sizes = [8, 1], strides = [1, 1]} : vector<8x2xf32> to vector<8x1xf32>
      %207 = arith.addf %205, %206 : vector<8x1xf32>
      %208 = arith.index_cast %24 : i32 to index
      %c0_156 = arith.constant 0 : index
      %c0_157 = arith.constant 0 : index
      %209 = vector.load %arg21[%208, %c0_156, %c0_157] : memref<2x8x1xf32, #tpu.memory_space<vmem>>, vector<1x8x1xf32>
      %210 = vector.shape_cast %209 : vector<1x8x1xf32> to vector<8x1xf32>
      %211 = vector.shape_cast %207 : vector<8x1xf32> to vector<1x8x1xf32>
      tpu.vector_store %arg21[%208, %c0_156, %c0_157], %211 {strides = array<i32>} : memref<2x8x1xf32, #tpu.memory_space<vmem>>, vector<1x8x1xf32>,
      %212 = vector.broadcast %207 : vector<8x1xf32> to vector<8x256xf32>
      %213 = arith.mulf %172, %212 : vector<8x256xf32>
      %214 = arith.addf %213, %177 : vector<8x256xf32>
      %cst_158 = arith.constant 0.000000e+00 : f32
      %215 = vector.broadcast %cst_158 : f32 to vector<8x256xf32>
      %216 = arith.maximumf %214, %215 : vector<8x256xf32>
      %217 = arith.truncf %216 : vector<8x256xf32> to vector<8x256xbf16>
      %c0_159 = arith.constant 0 : index
      %c128_160 = arith.constant 128 : index
      %218 = vector.load %arg22[%c0_159, %c128_160] : memref<8x512xbf16, #tpu.memory_space<vmem>>, vector<8x256xbf16>
      tpu.vector_store %arg22[%c0_159, %c128_160], %217 {strides = array<i32>} : memref<8x512xbf16, #tpu.memory_space<vmem>>, vector<8x256xbf16>,
      %219 = vector.shape_cast %5 : vector<1x256xi1> to vector<1x256xi1>
      %220 = vector.broadcast %219 : vector<1x256xi1> to vector<8x256xi1>
      %221 = vector.shape_cast %8 : vector<1x256xi1> to vector<1x256xi1>
      %222 = vector.broadcast %221 : vector<1x256xi1> to vector<8x256xi1>
      %c0_161 = arith.constant 0 : index
      %c111_162 = arith.constant 111 : index
      %223 = vector.load %arg22[%c0_161, %c111_162] : memref<8x512xbf16, #tpu.memory_space<vmem>>, vector<8x256xbf16>
      %c0_i32_163 = arith.constant 0 : i32
      %224 = arith.sitofp %c0_i32_163 : i32 to bf16
      %225 = vector.broadcast %224 : bf16 to vector<8x256xbf16>
      %226 = arith.select %220, %223, %225 : vector<8x256xi1>, vector<8x256xbf16>
      %c0_164 = arith.constant 0 : index
      %c0_165 = arith.constant 0 : index
      %c0_166 = arith.constant 0 : index
      %227 = vector.load %arg17[%c0_164, %c0_165, %c0_166] : memref<9x4x8xbf16, #tpu.memory_space<vmem>>, vector<1x4x8xbf16>
      %228 = vector.shape_cast %227 : vector<1x4x8xbf16> to vector<4x8xbf16>
      %cst_167 = arith.constant dense<0.000000e+00> : vector<4x256xf32>
      %229 = tpu.matmul %228, %226, %cst_167 {dimension_numbers = #tpu.dot_dimension_numbers<[1], [0], [0], [1], [0, 0, 1, 1], [], []>} : vector<4x8xbf16>, vector<8x256xbf16>, vector<4x256xf32> -> vector<4x256xf32>
      %c0_168 = arith.constant 0 : index
      %c112_169 = arith.constant 112 : index
      %230 = vector.load %arg22[%c0_168, %c112_169] : memref<8x512xbf16, #tpu.memory_space<vmem>>, vector<8x256xbf16>
      %c1_170 = arith.constant 1 : index
      %c0_171 = arith.constant 0 : index
      %c0_172 = arith.constant 0 : index
      %231 = vector.load %arg17[%c1_170, %c0_171, %c0_172] : memref<9x4x8xbf16, #tpu.memory_space<vmem>>, vector<1x4x8xbf16>
      %232 = vector.shape_cast %231 : vector<1x4x8xbf16> to vector<4x8xbf16>
      %cst_173 = arith.constant dense<0.000000e+00> : vector<4x256xf32>
      %233 = tpu.matmul %232, %230, %cst_173 {dimension_numbers = #tpu.dot_dimension_numbers<[1], [0], [0], [1], [0, 0, 1, 1], [], []>} : vector<4x8xbf16>, vector<8x256xbf16>, vector<4x256xf32> -> vector<4x256xf32>
      %234 = arith.addf %229, %233 : vector<4x256xf32>
      %c0_174 = arith.constant 0 : index
      %c113_175 = arith.constant 113 : index
      %235 = vector.load %arg22[%c0_174, %c113_175] : memref<8x512xbf16, #tpu.memory_space<vmem>>, vector<8x256xbf16>
      %c0_i32_176 = arith.constant 0 : i32
      %236 = arith.sitofp %c0_i32_176 : i32 to bf16
      %237 = vector.broadcast %236 : bf16 to vector<8x256xbf16>
      %238 = arith.select %222, %235, %237 : vector<8x256xi1>, vector<8x256xbf16>
      %c2_177 = arith.constant 2 : index
      %c0_178 = arith.constant 0 : index
      %c0_179 = arith.constant 0 : index
      %239 = vector.load %arg17[%c2_177, %c0_178, %c0_179] : memref<9x4x8xbf16, #tpu.memory_space<vmem>>, vector<1x4x8xbf16>
      %240 = vector.shape_cast %239 : vector<1x4x8xbf16> to vector<4x8xbf16>
      %cst_180 = arith.constant dense<0.000000e+00> : vector<4x256xf32>
      %241 = tpu.matmul %240, %238, %cst_180 {dimension_numbers = #tpu.dot_dimension_numbers<[1], [0], [0], [1], [0, 0, 1, 1], [], []>} : vector<4x8xbf16>, vector<8x256xbf16>, vector<4x256xf32> -> vector<4x256xf32>
      %242 = arith.addf %234, %241 : vector<4x256xf32>
      %c0_181 = arith.constant 0 : index
      %c127_182 = arith.constant 127 : index
      %243 = vector.load %arg22[%c0_181, %c127_182] : memref<8x512xbf16, #tpu.memory_space<vmem>>, vector<8x256xbf16>
      %c0_i32_183 = arith.constant 0 : i32
      %244 = arith.sitofp %c0_i32_183 : i32 to bf16
      %245 = vector.broadcast %244 : bf16 to vector<8x256xbf16>
      %246 = arith.select %220, %243, %245 : vector<8x256xi1>, vector<8x256xbf16>
      %c3_184 = arith.constant 3 : index
      %c0_185 = arith.constant 0 : index
      %c0_186 = arith.constant 0 : index
      %247 = vector.load %arg17[%c3_184, %c0_185, %c0_186] : memref<9x4x8xbf16, #tpu.memory_space<vmem>>, vector<1x4x8xbf16>
      %248 = vector.shape_cast %247 : vector<1x4x8xbf16> to vector<4x8xbf16>
      %cst_187 = arith.constant dense<0.000000e+00> : vector<4x256xf32>
      %249 = tpu.matmul %248, %246, %cst_187 {dimension_numbers = #tpu.dot_dimension_numbers<[1], [0], [0], [1], [0, 0, 1, 1], [], []>} : vector<4x8xbf16>, vector<8x256xbf16>, vector<4x256xf32> -> vector<4x256xf32>
      %250 = arith.addf %242, %249 : vector<4x256xf32>
      %c0_188 = arith.constant 0 : index
      %c128_189 = arith.constant 128 : index
      %251 = vector.load %arg22[%c0_188, %c128_189] : memref<8x512xbf16, #tpu.memory_space<vmem>>, vector<8x256xbf16>
      %c4_190 = arith.constant 4 : index
      %c0_191 = arith.constant 0 : index
      %c0_192 = arith.constant 0 : index
      %252 = vector.load %arg17[%c4_190, %c0_191, %c0_192] : memref<9x4x8xbf16, #tpu.memory_space<vmem>>, vector<1x4x8xbf16>
      %253 = vector.shape_cast %252 : vector<1x4x8xbf16> to vector<4x8xbf16>
      %cst_193 = arith.constant dense<0.000000e+00> : vector<4x256xf32>
      %254 = tpu.matmul %253, %251, %cst_193 {dimension_numbers = #tpu.dot_dimension_numbers<[1], [0], [0], [1], [0, 0, 1, 1], [], []>} : vector<4x8xbf16>, vector<8x256xbf16>, vector<4x256xf32> -> vector<4x256xf32>
      %255 = arith.addf %250, %254 : vector<4x256xf32>
      %c0_194 = arith.constant 0 : index
      %c129_195 = arith.constant 129 : index
      %256 = vector.load %arg22[%c0_194, %c129_195] : memref<8x512xbf16, #tpu.memory_space<vmem>>, vector<8x256xbf16>
      %c0_i32_196 = arith.constant 0 : i32
      %257 = arith.sitofp %c0_i32_196 : i32 to bf16
      %258 = vector.broadcast %257 : bf16 to vector<8x256xbf16>
      %259 = arith.select %222, %256, %258 : vector<8x256xi1>, vector<8x256xbf16>
      %c5_197 = arith.constant 5 : index
      %c0_198 = arith.constant 0 : index
      %c0_199 = arith.constant 0 : index
      %260 = vector.load %arg17[%c5_197, %c0_198, %c0_199] : memref<9x4x8xbf16, #tpu.memory_space<vmem>>, vector<1x4x8xbf16>
      %261 = vector.shape_cast %260 : vector<1x4x8xbf16> to vector<4x8xbf16>
      %cst_200 = arith.constant dense<0.000000e+00> : vector<4x256xf32>
      %262 = tpu.matmul %261, %259, %cst_200 {dimension_numbers = #tpu.dot_dimension_numbers<[1], [0], [0], [1], [0, 0, 1, 1], [], []>} : vector<4x8xbf16>, vector<8x256xbf16>, vector<4x256xf32> -> vector<4x256xf32>
      %263 = arith.addf %255, %262 : vector<4x256xf32>
      %c0_201 = arith.constant 0 : index
      %c143_202 = arith.constant 143 : index
      %264 = vector.load %arg22[%c0_201, %c143_202] : memref<8x512xbf16, #tpu.memory_space<vmem>>, vector<8x256xbf16>
      %c0_i32_203 = arith.constant 0 : i32
      %265 = arith.sitofp %c0_i32_203 : i32 to bf16
      %266 = vector.broadcast %265 : bf16 to vector<8x256xbf16>
      %267 = arith.select %220, %264, %266 : vector<8x256xi1>, vector<8x256xbf16>
      %c6_204 = arith.constant 6 : index
      %c0_205 = arith.constant 0 : index
      %c0_206 = arith.constant 0 : index
      %268 = vector.load %arg17[%c6_204, %c0_205, %c0_206] : memref<9x4x8xbf16, #tpu.memory_space<vmem>>, vector<1x4x8xbf16>
      %269 = vector.shape_cast %268 : vector<1x4x8xbf16> to vector<4x8xbf16>
      %cst_207 = arith.constant dense<0.000000e+00> : vector<4x256xf32>
      %270 = tpu.matmul %269, %267, %cst_207 {dimension_numbers = #tpu.dot_dimension_numbers<[1], [0], [0], [1], [0, 0, 1, 1], [], []>} : vector<4x8xbf16>, vector<8x256xbf16>, vector<4x256xf32> -> vector<4x256xf32>
      %271 = arith.addf %263, %270 : vector<4x256xf32>
      %c0_208 = arith.constant 0 : index
      %c144_209 = arith.constant 144 : index
      %272 = vector.load %arg22[%c0_208, %c144_209] : memref<8x512xbf16, #tpu.memory_space<vmem>>, vector<8x256xbf16>
      %c7_210 = arith.constant 7 : index
      %c0_211 = arith.constant 0 : index
      %c0_212 = arith.constant 0 : index
      %273 = vector.load %arg17[%c7_210, %c0_211, %c0_212] : memref<9x4x8xbf16, #tpu.memory_space<vmem>>, vector<1x4x8xbf16>
      %274 = vector.shape_cast %273 : vector<1x4x8xbf16> to vector<4x8xbf16>
      %cst_213 = arith.constant dense<0.000000e+00> : vector<4x256xf32>
      %275 = tpu.matmul %274, %272, %cst_213 {dimension_numbers = #tpu.dot_dimension_numbers<[1], [0], [0], [1], [0, 0, 1, 1], [], []>} : vector<4x8xbf16>, vector<8x256xbf16>, vector<4x256xf32> -> vector<4x256xf32>
      %276 = arith.addf %271, %275 : vector<4x256xf32>
      %c0_214 = arith.constant 0 : index
      %c145_215 = arith.constant 145 : index
      %277 = vector.load %arg22[%c0_214, %c145_215] : memref<8x512xbf16, #tpu.memory_space<vmem>>, vector<8x256xbf16>
      %c0_i32_216 = arith.constant 0 : i32
      %278 = arith.sitofp %c0_i32_216 : i32 to bf16
      %279 = vector.broadcast %278 : bf16 to vector<8x256xbf16>
      %280 = arith.select %222, %277, %279 : vector<8x256xi1>, vector<8x256xbf16>
      %c8_217 = arith.constant 8 : index
      %c0_218 = arith.constant 0 : index
      %c0_219 = arith.constant 0 : index
      %281 = vector.load %arg17[%c8_217, %c0_218, %c0_219] : memref<9x4x8xbf16, #tpu.memory_space<vmem>>, vector<1x4x8xbf16>
      %282 = vector.shape_cast %281 : vector<1x4x8xbf16> to vector<4x8xbf16>
      %cst_220 = arith.constant dense<0.000000e+00> : vector<4x256xf32>
      %283 = tpu.matmul %282, %280, %cst_220 {dimension_numbers = #tpu.dot_dimension_numbers<[1], [0], [0], [1], [0, 0, 1, 1], [], []>} : vector<4x8xbf16>, vector<8x256xbf16>, vector<4x256xf32> -> vector<4x256xf32>
      %284 = arith.addf %276, %283 : vector<4x256xf32>
      %285 = vector.broadcast %13 : vector<4x1xf32> to vector<4x256xf32>
      %286 = arith.mulf %284, %285 : vector<4x256xf32>
      %287 = vector.broadcast %14 : vector<4x1xf32> to vector<4x256xf32>
      %288 = arith.addf %286, %287 : vector<4x256xf32>
      %cst_221 = arith.constant 0.000000e+00 : f32
      %289 = vector.broadcast %cst_221 : f32 to vector<4x256xf32>
      %290 = arith.maximumf %288, %289 : vector<4x256xf32>
      %291 = arith.index_cast %24 : i32 to index
      %c0_222 = arith.constant 0 : index
      %c0_223 = arith.constant 0 : index
      %292 = vector.load %arg20[%291, %c0_222, %c0_223] : memref<2x4x256xf32, #tpu.memory_space<vmem>>, vector<1x4x256xf32>
      %293 = vector.shape_cast %292 : vector<1x4x256xf32> to vector<4x256xf32>
      %294 = vector.shape_cast %290 : vector<4x256xf32> to vector<1x4x256xf32>
      tpu.vector_store %arg20[%291, %c0_222, %c0_223], %294 {strides = array<i32>} : memref<2x4x256xf32, #tpu.memory_space<vmem>>, vector<1x4x256xf32>,
    }
    %c2_i32_34 = arith.constant 2 : i32
    return
  }
  func.func @transform_0(%arg0: i32) -> (i32, i32, i32) {
    %c0_i32 = arith.constant 0 : i32
    %c0_i32_0 = arith.constant 0 : i32
    %c0_i32_1 = arith.constant 0 : i32
    return %arg0, %c0_i32, %c0_i32_0 : i32, i32, i32
  }
  func.func @transform_1(%arg0: i32) -> (i32, i32) {
    %c0_i32 = arith.constant 0 : i32
    %c0_i32_0 = arith.constant 0 : i32
    %c0_i32_1 = arith.constant 0 : i32
    return %c0_i32, %c0_i32_0 : i32, i32
  }
  func.func @transform_2(%arg0: i32) -> (i32, i32) {
    %c0_i32 = arith.constant 0 : i32
    %c0_i32_0 = arith.constant 0 : i32
    %c0_i32_1 = arith.constant 0 : i32
    return %c0_i32, %c0_i32_0 : i32, i32
  }
  func.func @transform_3(%arg0: i32) -> (i32, i32, i32) {
    %c0_i32 = arith.constant 0 : i32
    %c0_i32_0 = arith.constant 0 : i32
    %c0_i32_1 = arith.constant 0 : i32
    %c0_i32_2 = arith.constant 0 : i32
    return %c0_i32, %c0_i32_0, %c0_i32_1 : i32, i32, i32
  }
  func.func @transform_4(%arg0: i32) -> (i32, i32) {
    %c0_i32 = arith.constant 0 : i32
    %c0_i32_0 = arith.constant 0 : i32
    %c0_i32_1 = arith.constant 0 : i32
    return %c0_i32, %c0_i32_0 : i32, i32
  }
  func.func @transform_5(%arg0: i32) -> (i32, i32) {
    %c0_i32 = arith.constant 0 : i32
    %c0_i32_0 = arith.constant 0 : i32
    %c0_i32_1 = arith.constant 0 : i32
    return %c0_i32, %c0_i32_0 : i32, i32
  }
  func.func @transform_6(%arg0: i32) -> (i32, i32, i32) {
    %c0_i32 = arith.constant 0 : i32
    %c0_i32_0 = arith.constant 0 : i32
    %c0_i32_1 = arith.constant 0 : i32
    %c0_i32_2 = arith.constant 0 : i32
    return %c0_i32, %c0_i32_0, %c0_i32_1 : i32, i32, i32
  }
  func.func @transform_7(%arg0: i32) -> (i32, i32) {
    %c0_i32 = arith.constant 0 : i32
    %c0_i32_0 = arith.constant 0 : i32
    %c0_i32_1 = arith.constant 0 : i32
    return %c0_i32, %c0_i32_0 : i32, i32
  }
  func.func @transform_8(%arg0: i32) -> (i32, i32) {
    %c0_i32 = arith.constant 0 : i32
    %c0_i32_0 = arith.constant 0 : i32
    %c0_i32_1 = arith.constant 0 : i32
    return %c0_i32, %c0_i32_0 : i32, i32
  }
  func.func @transform_9(%arg0: i32) -> (i32, i32) {
    %c0_i32 = arith.constant 0 : i32
    %c0_i32_0 = arith.constant 0 : i32
    %c0_i32_1 = arith.constant 0 : i32
    return %c0_i32, %c0_i32_0 : i32, i32
  }
  func.func @transform_10(%arg0: i32) -> (i32, i32) {
    %c0_i32 = arith.constant 0 : i32
    %c0_i32_0 = arith.constant 0 : i32
    %c0_i32_1 = arith.constant 0 : i32
    return %c0_i32, %c0_i32_0 : i32, i32
  }
  func.func @transform_11(%arg0: i32) -> (i32, i32) {
    %c0_i32 = arith.constant 0 : i32
    %c0_i32_0 = arith.constant 0 : i32
    %c0_i32_1 = arith.constant 0 : i32
    return %c0_i32, %c0_i32_0 : i32, i32
  }
  func.func @transform_12(%arg0: i32) -> (i32, i32) {
    %c0_i32 = arith.constant 0 : i32
    %c0_i32_0 = arith.constant 0 : i32
    %c0_i32_1 = arith.constant 0 : i32
    return %c0_i32, %c0_i32_0 : i32, i32
  }
  func.func @transform_13(%arg0: i32) -> (i32, i32) {
    %c0_i32 = arith.constant 0 : i32
    %c0_i32_0 = arith.constant 0 : i32
    %c0_i32_1 = arith.constant 0 : i32
    return %c0_i32, %c0_i32_0 : i32, i32
  }
  func.func @transform_14(%arg0: i32) -> (i32, i32) {
    %c0_i32 = arith.constant 0 : i32
    %c0_i32_0 = arith.constant 0 : i32
    %c0_i32_1 = arith.constant 0 : i32
    return %c0_i32, %c0_i32_0 : i32, i32
  }
  func.func @transform_15(%arg0: i32) -> (i32, i32) {
    %c0_i32 = arith.constant 0 : i32
    %c0_i32_0 = arith.constant 0 : i32
    %c0_i32_1 = arith.constant 0 : i32
    return %c0_i32, %c0_i32_0 : i32, i32
  }
  func.func @transform_16(%arg0: i32) -> (i32, i32, i32) {
    %c0_i32 = arith.constant 0 : i32
    %c0_i32_0 = arith.constant 0 : i32
    %c0_i32_1 = arith.constant 0 : i32
    %c0_i32_2 = arith.constant 0 : i32
    return %c0_i32, %c0_i32_0, %c0_i32_1 : i32, i32, i32
  }
  func.func @transform_17(%arg0: i32) -> (i32, i32) {
    %c0_i32 = arith.constant 0 : i32
    %c0_i32_0 = arith.constant 0 : i32
    %c0_i32_1 = arith.constant 0 : i32
    return %c0_i32, %c0_i32_0 : i32, i32
  }
  func.func @transform_18(%arg0: i32) -> (i32, i32) {
    %c0_i32 = arith.constant 0 : i32
    %c0_i32_0 = arith.constant 0 : i32
    %c0_i32_1 = arith.constant 0 : i32
    return %c0_i32, %c0_i32_0 : i32, i32
  }
  func.func @transform_19(%arg0: i32) -> (i32, i32, i32) {
    %c0_i32 = arith.constant 0 : i32
    %c0_i32_0 = arith.constant 0 : i32
    %c0_i32_1 = arith.constant 0 : i32
    return %arg0, %c0_i32, %c0_i32_0 : i32, i32, i32
  }
  func.func @transform_20(%arg0: i32) -> (i32, i32, i32) {
    %c0_i32 = arith.constant 0 : i32
    %c0_i32_0 = arith.constant 0 : i32
    %c0_i32_1 = arith.constant 0 : i32
    return %arg0, %c0_i32, %c0_i32_0 : i32, i32, i32
  }
}

</mosaic_0001>

<bundles_post_ra>
// kernel: se_conv_block_forward.1
= control target key start
LH: loop header
LB: loop body
LE: loop exit
PB: predicated region body
PF: predicated region fallthrough
CT: control target
= control target key end

     0   :  { %v2662_v0 = vmov 0   ;;  %s3425_s0 = inlined_call_operand.vmem [shape: bf16[2,8,256], index: 0, kind: input, shape index: {}]   ;;  %s3426_s1 = inlined_call_operand.vmem [shape: f32[1,256], index: 1, kind: input, shape index: {}]   ;;  %s3427_s2 = inlined_call_operand.vmem [shape: f32[1,256], index: 2, kind: input, shape index: {}]   ;;  %s3428_s3 = inlined_call_operand.vmem [shape: bf16[9,4,8], index: 3, kind: input, shape index: {}]   ;;  %s3429_s4 = inlined_call_operand.vmem [shape: f32[4,1], index: 4, kind: input, shape index: {}]   ;;  %s3430_s5 = inlined_call_operand.vmem [shape: f32[4,1], index: 5, kind: input, shape index: {}]   ;;  %s3431_s6 = inlined_call_operand.vmem [shape: bf16[9,8,4], index: 6, kind: input, shape index: {}]   ;;  %s3432_s7 = inlined_call_operand.vmem [shape: f32[8,1], index: 7, kind: input, shape index: {}]   ;;  %s3433_s8 = inlined_call_operand.vmem [shape: f32[8,1], index: 8, kind: input, shape index: {}]   ;;  %s3434_s10 = inlined_call_operand.vmem [shape: f32[8,1], index: 10, kind: input, shape index: {}]   ;;  %s3435_s16 = inlined_call_operand.vmem [shape: bf16[9,4,8], index: 16, kind: input, shape index: {}]   ;;  %s3436_s17 = inlined_call_operand.vmem [shape: f32[4,1], index: 17, kind: input, shape index: {}]   ;;  %s3437_s18 = inlined_call_operand.vmem [shape: f32[4,1], index: 18, kind: input, shape index: {}]   ;;  %s3438_s19 = inlined_call_operand.vmem [shape: f32[2,4,256], index: 19, kind: output, shape index: {0}]   ;;  %s3439_s20 = inlined_call_operand.vmem [shape: f32[2,8,1], index: 20, kind: output, shape index: {1}]   ;;  %s3440_s9 = inlined_call_operand.vmem [shape: bf16[8,8], index: 9, kind: input, shape index: {}]   ;;  %s3441_s11 = inlined_call_operand.vmem [shape: f32[8,1], index: 11, kind: input, shape index: {}]   ;;  %s3442_s12 = inlined_call_operand.vmem [shape: f32[2,8], index: 12, kind: input, shape index: {}]   ;;  %s3443_s13 = inlined_call_operand.vmem [shape: f32[2,1], index: 13, kind: input, shape index: {}]   ;;  %s3444_s14 = inlined_call_operand.vmem [shape: f32[8,2], index: 14, kind: input, shape index: {}]   ;;  %s3445_s15 = inlined_call_operand.vmem [shape: f32[8,1], index: 15, kind: input, shape index: {}]  }
   0x1   :  { %3458 = sst [smem:[#allocation3_spill]] %s3425_s0  ;;  %67 = vst [vmem:[#allocation2] sm:$0xf] %v2662_v0  ;;  %68 = vst [vmem:[#allocation2 + $0xc] sm:$0xf] %v2662_v0  ;;  %v2804_v5 = vld [vmem:[%s3432_s7] sm:$0xff] }
   0x2   :  { %3459 = sst [smem:[#allocation4_spill]] %s3426_s1  ;;  %v2799_v4 = vld [vmem:[%s3430_s5] sm:$0xf] }
   0x3   :  { %3460 = sst [smem:[#allocation5_spill]] %s3427_s2  ;;  %v2809_v6 = vld [vmem:[%s3433_s8] sm:$0xff] }
   0x4   :  { %3461 = sst [smem:[#allocation6_spill]] %s3428_s3  ;;  %v2814_v7 = vld [vmem:[%s3436_s17] sm:$0xf] }
   0x5   :  { %3462 = sst [smem:[#allocation7_spill]] %s3429_s4  ;;  %v2819_v8 = vld [vmem:[%s3437_s18] sm:$0xf] }
   0x6   :  { %s3463_s23 = sld [smem:[#allocation4_spill]]  ;;  %v2824_v9 = vld [vmem:[%s3434_s10] sm:$0xff] }
   0x7   :  { %s3464_s25 = sld [smem:[#allocation5_spill]]  ;;  %v2829_v10 = vld [vmem:[%s3441_s11] sm:$0xff] }
   0x8   :  { %s3465_s27 = sld [smem:[#allocation7_spill]]  ;;  %v2834_v11 = vld [vmem:[%s3440_s9] sm:$0xf]  ;;  %s2856_s9 = smov 0  }
   0x9   :  { %v2839_v12 = vld [vmem:[%s3442_s12] sm:$0x3] }
   0xa   :  { %v2844_v13 = vld [vmem:[%s3443_s13] sm:$0x3] }
   0xb   :  { %v2849_v14 = vld [vmem:[%s3444_s14] sm:$0xff] }
   0xc   :  { %v2782_v1 = vld [vmem:[%s3463_s23] sm:$0x3] }
   0xd   :  { %v2787_v2 = vld [vmem:[%s3464_s25] sm:$0x3] }
   0xe   :  { %v2792_v3 = vld [vmem:[%s3465_s27] sm:$0xf] }
   0xf   :  { %v2854_v15 = vld [vmem:[%s3445_s15] sm:$0xff] }
  0x10 LB: > { %v98_v16 = vlaneseq  ;;  %v2663_v17 = vmov 0   ;;  %vm3466_vm0 = vcmp.gt.f32.partialorder %v2782_v1, 0.5  ;;  %vm3467_vm1 = vcmp.gt.f32.partialorder %v2787_v2, 0.5  ;;  %s2873_s12 = sshll.u32 %s2660_s9, 3  ;;  %s3468_s15 = sld [smem:[#allocation3_spill]]  ;;  %s2660_s9 = sphi %s2856_s9, %s91_s9  }
  0x11   : > { %2631 = vset.pattern.permute.xlu1 %v2663_v17  ;;  %2630 = vset.pattern.permute.xlu0 %v2663_v17  ;;  %v97_v19 = vsel %vm3466_vm0, 1, %v2663_v17  ;;  %v108_v20 = vsel %vm3467_vm1, 1, %v2663_v17  ;;  %s2664_s30 = smov 111   ;;  %s2665_s0 = smov 127   ;;  %vm3454_vm10 = vcmask 908288   ;;  %vm276_vm13 = vcmask 924672  }
  0x12   : > { %v99_v18 = vshrl.u32 %v98_v16, 7  ;;  %195 = vmatprep.mubr.bf16.mxu0 %v2663_v17  ;;  %262 = vmatprep.mubr.bf16.mxu1 %v2663_v17  ;;  %s2666_s21 = smov 113   ;;  %s2667_s1 = smov 1   ;;  %v2911_v47 = vld [vmem:[#allocation2 + $0xc] sm:$0xf]  ;;  %vm3452_vm0 = vcmask 7168  }
  0x13   : > { %s2668_s22 = smov 15   ;;  %s2669_s23 = smov 17   ;;  %vm298_vm1 = vcmask 121856  }
  0x14   : > { %v100_v21 = vsub.s32 0, %v99_v18  ;;  %v104_v22 = vsub.s32 1, %v99_v18  ;;  %s2670_s24 = smov 16   ;;  %s3479_s7 = sld [smem:[#allocation6_spill]] }
  0x15   : > { %s2671_s25 = smov 112   ;;  %s1726_s18 = scalar_lea.vmem %s3439_s20, %s2873_s12 }
  0x16   : > { %v101_v23 = vrot.slane %v97_v19, %v100_v21  ;;  %v105_v24 = vrot.slane %v97_v19, %v104_v22  ;;  %v112_v25 = vrot.slane %v108_v20, %v100_v21  ;;  %v116_v26 = vrot.slane %v108_v20, %v104_v22  ;;  %s94_s29 = scalar_lea.vmem %s3468_s15, %s2873_s12  ;;  %s2401_s3 = scalar_lea.vmem %s3438_s19, %s2873_s12 }
  0x17   : > { %v2879_v27 = vld [vmem:[%s94_s29] sm:$0xff]  ;;  %s91_s9 = sadd.s32 1, %s2660_s9  }
  0x18   : > { %vm106_vm2 = vcmp.eq.s32.totalorder %v101_v23, 1  ;;  %vm107_vm3 = vcmp.eq.s32.totalorder %v105_v24, 1  ;;  %vm117_vm4 = vcmp.eq.s32.totalorder %v112_v25, 1  ;;  %vm118_vm5 = vcmp.eq.s32.totalorder %v116_v26, 1  ;;  %96 = vst [vmem:[#allocation2 + $0x4] sm:$0xff] %v2879_v27  ;;  %p88_p0 = scmp.ge.s32.totalorder %s91_s9, 2  }
  0x19   : > { %vm121_vm6 = vmpackc.low %vm107_vm3, %vm106_vm2  ;;  %vm356_vm2 = vcmask 1039360   ;;  %vm3447_vm3 = vcmask 130048  }
  0x1a   : > { %v122_v28 = vsel %vm121_vm6, 65537, %v2663_v17  ;;  %vm271_vm7 = vmpackc.low %vm118_vm5, %vm117_vm4  ;;  %vm156_vm5 = vcmask 1043456  }
  0x1b   : > { %123 = vrot.lane.b32.xlu0 %v122_v28, %s2664_s30  ;;  %353 = vrot.lane.b32.xlu1 %v122_v28, %s2665_s0  ;;  %v272_v29 = vsel %vm271_vm7, 65537, %v2663_v17  ;;  %vm3453_vm7 = vcmask 64512  }
  0x1f   : > { %273 = vrot.lane.b32.xlu0 %v272_v29, %s2666_s21  ;;  %495 = vrot.lane.b32.xlu1 %v272_v29, %s2667_s1  ;;  %v2888_v30 = vld [vmem:[#allocation2] sm:$0xff]  ;;  %v120_v33 = vld [vmem:[#allocation2 + $0x8] sm:$0xf] }
  0x20   : > { %v2425_v31 = vcombine.low %v2888_v30, %v2888_v30  ;;  %v2426_v32 = vcombine.high %v2888_v30, %v2888_v30  ;;  %v2427_v34 = vcombine.low %v120_v33, %v120_v33 }
  0x23   : > { %573 = vrot.lane.b32.xlu0 %v122_v28, %s2668_s22  ;;  %722 = vrot.lane.b32.xlu1 %v272_v29, %s2669_s23  ;;  %v2424_v29 = vld [vmem:[%s3479_s7 + $0x2] sm:$0x3] }
  0x27   : > { %143 = vrot.lane.b32.xlu0 %v2425_v31, %s2670_s24  ;;  %145 = vrot.lane.b32.xlu1 %v2426_v32, %s2670_s24 }
  0x2b   : > { %147 = vrot.lane.b32.xlu0 %v2427_v34, %s2670_s24 }
  0x8d   : > { %v124_v35 = vpop.permute.xlu0 %123  ;;  %v354_v36 = vpop.permute.xlu1 %353 }
  0x8e   : > { %v125_v37 = vrot.slane %v124_v35, 4  ;;  %v355_v38 = vrot.slane %v354_v36, 4 }
  0x90   : > { %vm2899_vm8 = vcmp.ne.s16.totalorder %v125_v37, 0  ;;  %vm2903_vm9 = vcmp.ne.s16.totalorder %v355_v38, 0  ;;  %v2922_v51 = vsel %vm3454_vm10, %v125_v37, %v124_v35  ;;  %v2951_v20 = vsel %vm356_vm2, %v355_v38, %v354_v36 }
  0x91   : > { %v274_v41 = vpop.permute.xlu0 %273  ;;  %v496_v42 = vpop.permute.xlu1 %495  ;;  %v131_v43 = vsel %vm2899_vm8, %v120_v33, 0  ;;  %v361_v46 = vsel %vm2903_vm9, %v120_v33, 0  ;;  %vm3451_vm14 = vcmp.ne.s16.totalorder %v2922_v51, 0  ;;  %vm3448_vm6 = vcmp.ne.s16.totalorder %v2951_v20, 0 }
  0x92   : > { %v275_v44 = vrot.slane %v274_v41, 4  ;;  %v497_v45 = vrot.slane %v496_v42, 4  ;;  %v2432_v48 = vcombine.low %v131_v43, %v131_v43  ;;  %v2444_v53 = vcombine.low %v361_v46, %v361_v46 }
  0x93   : > { %v130_v18 = vsel %vm3451_vm14, %v2888_v30, 0  ;;  %v360_v32 = vsel %vm3448_vm6, %v2888_v30, 0  ;;  %v2989_v38 = vcombine.high %v2879_v27, %v2879_v27  ;;  %vm218_vm6 = vcmask 138240  }
  0x94   : > { %vm2913_vm11 = vcmp.ne.s16.totalorder %v275_v44, 0  ;;  %vm2917_vm12 = vcmp.ne.s16.totalorder %v497_v45, 0  ;;  %216 = vrot.lane.b32.xlu1 %v2432_v48, %s2669_s23  ;;  %v2939_v61 = vsel %vm276_vm13, %v275_v44, %v274_v41  ;;  %v2431_v22 = vcombine.high %v130_v18, %v130_v18 }
  0x95   : > { %v574_v52 = vpop.permute.xlu0 %573  ;;  %v281_v54 = vsel %vm2913_vm11, %v120_v33, 0  ;;  %v502_v55 = vsel %vm2917_vm12, %v2911_v47, 0  ;;  %v2930_v58 = vpop.permute.xlu1 %722  ;;  %vm3449_vm4 = vcmp.ne.s16.totalorder %v2939_v61, 0  ;;  %v2430_v26 = vcombine.low %v130_v18, %v130_v18 }
  0x96   : > { %v575_v56 = vrot.slane %v574_v52, 4  ;;  %v2438_v57 = vcombine.low %v281_v54, %v281_v54  ;;  %v2455_v60 = vcombine.low %v502_v55, %v502_v55  ;;  %v280_v25 = vsel %vm3449_vm4, %v2888_v30, 0 }
  0x97   : > { %v2436_v31 = vcombine.low %v280_v25, %v280_v25  ;;  %v2437_v33 = vcombine.high %v280_v25, %v280_v25  ;;  %v2974_v34 = vsel %vm3452_vm0, %v497_v45, %v496_v42  ;;  %v2443_v35 = vcombine.high %v360_v32, %v360_v32 }
  0x98   : > { %vm2933_vm15 = vcmp.ne.s16.totalorder %v575_v56, 0  ;;  %296 = vrot.lane.b32.xlu0 %v2438_v57, %s2668_s22  ;;  %376 = vrot.lane.b32.xlu1 %v2444_v53, %s2667_s1  ;;  %v2442_v36 = vcombine.low %v360_v32, %v360_v32  ;;  %v2981_v30 = vcombine.low %v2879_v27, %v2879_v27  ;;  %v2984_v37 = vsel %vm298_vm1, %v575_v56, %v574_v52  ;;  %v132_v32 = vld [vmem:[%s3479_s7] sm:$0x3] }
  0x99   : > { %v580_v62 = vsel %vm2933_vm15, %v2911_v47, 0  ;;  %v144_v63 = vpop.permute.xlu0 %143  ;;  %v146_v19 = vpop.permute.xlu1 %145  ;;  %v724_v41 = vrot.slane %v2930_v58, 4  ;;  %vm3456_vm4 = vcmp.ne.s16.totalorder %v2984_v37, 0  ;;  %v2467_v54 = vcombine.low %v2911_v47, %v2911_v47 }
  0x9a   : > { %v2461_v0 = vcombine.low %v580_v62, %v580_v62  ;;  %v150_v24 = vsel %vm3447_vm3, %v144_v63, %v146_v19  ;;  %v579_v45 = vsel %vm3456_vm4, %v2879_v27, 0 }
  0x9b   : > { %v158_v28 = vsel %vm156_vm5, %v150_v24, 0  ;;  %v3002_v43 = vsel %vm218_vm6, %v724_v41, %v2930_v58  ;;  %v2460_v48 = vcombine.high %v579_v45, %v579_v45  ;;  %v2459_v52 = vcombine.low %v579_v45, %v579_v45 }
  0x9c   : > { %517 = vrot.lane.b32.xlu0 %v2455_v60, %s2665_s0  ;;  %595 = vrot.lane.b32.xlu1 %v2461_v0, %s2666_s21  ;;  %vm3016_vm14 = vcmp.ne.s16.totalorder %v724_v41, 0  ;;  %v3027_v60 = vld [vmem:[#allocation2 + $0xc] sm:$0x3] }
  0x9d   : > { %v148_v21 = vpop.permute.xlu0 %147  ;;  %v729_v57 = vsel %vm3016_vm14, %v2911_v47, 0  ;;  %v1245_v62 = vsel %vm2933_vm15, %v3027_v60, 0  ;;  %v1173_v47 = vsel %vm2917_vm12, %v3027_v60, 0 }
  0x9e   : > { %v151_v23 = vsel %vm3447_vm3, %v146_v19, %v148_v21  ;;  %vm3450_vm3 = vcmp.ne.s16.totalorder %v2974_v34, 0  ;;  %v2473_v58 = vcombine.low %v729_v57, %v729_v57  ;;  %v2514_v63 = vcombine.low %v1245_v62, %v1245_v62 }
  0x9f   : > { %2428 = vmatprep.subr.msk.bf16.mxu0 %vm156_vm5, %v151_v23  ;;  %v501_v42 = vsel %vm3450_vm3, %v2879_v27, 0  ;;  %vm3455_vm3 = vcmp.ne.s16.totalorder %v3002_v43, 0  ;;  %v2508_v0 = vcombine.low %v1173_v47, %v1173_v47 }
  0xa0   : > { %214 = vrot.lane.b32.xlu0 %v2431_v22, %s2669_s23  ;;  %178 = vmatpush1.bf16.msra.mxu0 %v158_v28  ;;  %v2453_v44 = vcombine.low %v501_v42, %v501_v42  ;;  %v2454_v46 = vcombine.high %v501_v42, %v501_v42  ;;  %v728_v53 = vsel %vm3455_vm3, %v2879_v27, 0 }
  0xa1   : > { %212 = vrot.lane.b32.xlu1 %v2430_v26, %s2669_s23  ;;  %v2471_v56 = vcombine.low %v728_v53, %v728_v53  ;;  %v2472_v27 = vcombine.high %v728_v53, %v728_v53 }
  0xa3   : > { %2429 = vmatmul.mubr.msk.bf16.vlgmr.msra.gmra.mxu0 %vm3453_vm7, %v2424_v29 }
  0xa4   : > { %292 = vrot.lane.b32.xlu0 %v2436_v31, %s2668_s22  ;;  %342 = vmatprep.mubr.bf16.mxu0 %v2663_v17 }
  0xa5   : > { %294 = vrot.lane.b32.xlu1 %v2437_v33, %s2668_s22 }
  0xa8   : > { %374 = vrot.lane.b32.xlu0 %v2443_v35, %s2667_s1 }
  0xa9   : > { %372 = vrot.lane.b32.xlu1 %v2442_v36, %s2667_s1 }
  0xac   : > { %661 = vrot.lane.b32.xlu0 %v2981_v30, %s2671_s25 }
  0xad   : > { %663 = vrot.lane.b32.xlu1 %v2989_v38, %s2671_s25 }
  0xb0   : > { %513 = vrot.lane.b32.xlu0 %v2453_v44, %s2665_s0  ;;  %v2435_v44 = vld [vmem:[%s3479_s7 + $0x4] sm:$0x3] }
  0xb1   : > { %515 = vrot.lane.b32.xlu1 %v2454_v46, %s2665_s0 }
  0xb4   : > { %593 = vrot.lane.b32.xlu0 %v2460_v48, %s2666_s21  ;;  %v3061_v48 = vsel %vm156_vm5, %v2981_v30, 0 }
  0xb5   : > { %591 = vrot.lane.b32.xlu1 %v2459_v52, %s2666_s21 }
  0xb8   : > { %665 = vrot.lane.b32.xlu0 %v2467_v54, %s2671_s25 }
  0xb9   : > { %740 = vrot.lane.b32.xlu1 %v2471_v56, %s2664_s30  ;;  %v2441_v56 = vld [vmem:[%s3479_s7 + $0x6] sm:$0x3] }
  0xbc   : > { %742 = vrot.lane.b32.xlu0 %v2472_v27, %s2664_s30  ;;  %v2447_v27 = vld [vmem:[%s3479_s7 + $0x8] sm:$0x3] }
  0xbd   : > { %744 = vrot.lane.b32.xlu1 %v2473_v58, %s2664_s30 }
  0xc0   : > { %802 = vperm.xlu0 %2630, %v2792_v3  }
  0xc1   : > { %809 = vperm.xlu1 %2631, %v2799_v4  }
  0xc4   : > { %1260 = vrot.lane.b32.xlu0 %v2514_v63, %s2666_s21 }
  0xc5   : > { %1188 = vrot.lane.b32.xlu1 %v2508_v0, %s2665_s0 }
 0x106   : > { %v217_v18 = vpop.permute.xlu1 %216 }
 0x10a   : > { %v297_v19 = vpop.permute.xlu0 %296  ;;  %v377_v21 = vpop.permute.xlu1 %376 }
 0x10e   : > { %v518_v22 = vpop.permute.xlu0 %517  ;;  %v596_v23 = vpop.permute.xlu1 %595 }
 0x112   : > { %v215_v24 = vpop.permute.xlu0 %214 }
 0x113   : > { %v213_v25 = vpop.permute.xlu1 %212  ;;  %v220_v26 = vsel %vm218_vm6, %v215_v24, %v217_v18  ;;  %v2452_v18 = vld [vmem:[%s3479_s7 + $0xa] sm:$0x3] }
 0x114   : > { %2433 = vmatprep.subr.msk.bf16.mxu1 %vm156_vm5, %v220_v26  ;;  %v219_v28 = vsel %vm218_vm6, %v213_v25, %v215_v24 }
 0x115   : > { %v225_v29 = vsel %vm156_vm5, %v219_v28, 0  ;;  %v2458_v28 = vld [vmem:[%s3479_s7 + $0xc] sm:$0x3] }
 0x116   : > { %245 = vmatpush1.bf16.msra.mxu1 %v225_v29  ;;  %v293_v31 = vpop.permute.xlu0 %292 }
 0x117   : > { %v295_v33 = vpop.permute.xlu1 %294 }
 0x118   : > { %v299_v35 = vsel %vm298_vm1, %v293_v31, %v295_v33  ;;  %v300_v36 = vsel %vm298_vm1, %v295_v33, %v297_v19  ;;  %v2464_v33 = vld [vmem:[%s3479_s7 + $0xe] sm:$0x3] }
 0x119   : > { %v305_v41 = vsel %vm156_vm5, %v299_v35, 0  ;;  %2434 = vmatmul.mubr.msk.bf16.vlgmr.msra.gmra.mxu1 %vm3453_vm7, %v132_v32  ;;  %2439 = vmatprep.subr.msk.bf16.mxu0 %vm156_vm5, %v300_v36 }
 0x11a   : > { %325 = vmatpush1.bf16.msra.mxu0 %v305_v41  ;;  %v375_v42 = vpop.permute.xlu0 %374  ;;  %422 = vmatprep.mubr.bf16.mxu1 %v2663_v17 }
 0x11b   : > { %v380_v45 = vsel %vm3452_vm0, %v375_v42, %v377_v21  ;;  %v373_v46 = vpop.permute.xlu1 %372  ;;  %2450 = vmatprep.subr.msk.bf16.mxu0 %vm156_vm5, %v2989_v38 }
 0x11c   : > { %v379_v52 = vsel %vm3452_vm0, %v373_v46, %v375_v42  ;;  %2445 = vmatprep.subr.msk.bf16.mxu1 %vm156_vm5, %v380_v45  ;;  %vm3457_vm0 = vcmask 916480  }
 0x11d   : > { %v385_v53 = vsel %vm156_vm5, %v379_v52, 0  ;;  %2440 = vmatmul.mubr.msk.bf16.vlgmr.msra.gmra.mxu0 %vm3453_vm7, %v2435_v44  ;;  %v2470_v44 = vld [vmem:[%s3479_s7 + $0x10] sm:$0x3] }
 0x11e   : > { %405 = vmatpush1.bf16.msra.mxu1 %v385_v53  ;;  %v662_v54 = vpop.permute.xlu0 %661  ;;  %465 = vmatpush1.bf16.msra.mxu0 %v3061_v48 }
 0x11f   : > { %v664_v57 = vpop.permute.xlu1 %663  ;;  %482 = vmatprep.mubr.bf16.mxu0 %v2663_v17 }
 0x120   : > { %v668_v24 = vsel %vm3457_vm0, %v662_v54, %v664_v57 }
 0x121   : > { %2446 = vmatmul.mubr.msk.bf16.vlgmr.msra.gmra.mxu1 %vm3453_vm7, %v2441_v56  ;;  %v674_v31 = vsel %vm156_vm5, %v668_v24, 0 }
 0x122   : > { %v514_v30 = vpop.permute.xlu0 %513  ;;  %562 = vmatprep.mubr.bf16.mxu1 %v2663_v17 }
 0x123   : > { %v516_v58 = vpop.permute.xlu1 %515 }
 0x124   : > { %v519_v62 = vsel %vm356_vm2, %v514_v30, %v516_v58  ;;  %v520_v47 = vsel %vm356_vm2, %v516_v58, %v518_v22 }
 0x125   : > { %v525_v63 = vsel %vm156_vm5, %v519_v62, 0  ;;  %2451 = vmatmul.mubr.msk.bf16.vlgmr.msra.gmra.mxu0 %vm3453_vm7, %v2447_v27  ;;  %2456 = vmatprep.subr.msk.bf16.mxu1 %vm156_vm5, %v520_v47 }
 0x126   : > { %545 = vmatpush1.bf16.msra.mxu1 %v525_v63  ;;  %v594_v0 = vpop.permute.xlu0 %593  ;;  %640 = vmatprep.mubr.bf16.mxu0 %v2663_v17 }
 0x127   : > { %v598_v19 = vsel %vm276_vm13, %v594_v0, %v596_v23  ;;  %v592_v21 = vpop.permute.xlu1 %591 }
 0x128   : > { %v597_v22 = vsel %vm276_vm13, %v592_v21, %v594_v0  ;;  %2462 = vmatprep.subr.msk.bf16.mxu0 %vm156_vm5, %v598_v19 }
 0x129   : > { %v603_v25 = vsel %vm156_vm5, %v597_v22, 0  ;;  %2457 = vmatmul.mubr.msk.bf16.vlgmr.msra.gmra.mxu1 %vm3453_vm7, %v2452_v18 }
 0x12a   : > { %623 = vmatpush1.bf16.msra.mxu0 %v603_v25  ;;  %v666_v26 = vpop.permute.xlu0 %665  ;;  %711 = vmatprep.mubr.bf16.mxu1 %v2663_v17 }
 0x12b   : > { %v669_v23 = vsel %vm3457_vm0, %v664_v57, %v666_v26  ;;  %v741_v29 = vpop.permute.xlu1 %740 }
 0x12c   : > { %2468 = vmatprep.subr.msk.bf16.mxu1 %vm156_vm5, %v669_v23 }
 0x12d   : > { %2463 = vmatmul.mubr.msk.bf16.vlgmr.msra.gmra.mxu0 %vm3453_vm7, %v2458_v28  ;;  %694 = vmatpush1.bf16.msra.mxu1 %v674_v31 }
 0x12e   : > { %v743_v32 = vpop.permute.xlu0 %742  ;;  %789 = vmatprep.mubr.bf16.mxu0 %v2663_v17 }
 0x12f   : > { %v746_v35 = vsel %vm3454_vm10, %v741_v29, %v743_v32  ;;  %v745_v36 = vpop.permute.xlu1 %744 }
 0x130   : > { %v752_v41 = vsel %vm156_vm5, %v746_v35, 0  ;;  %v747_v42 = vsel %vm3454_vm10, %v743_v32, %v745_v36  ;;  %vm3483_vm10 = vcmp.ne.s16.totalorder %v2939_v61, 0 }
 0x131   : > { %2469 = vmatmul.mubr.msk.bf16.vlgmr.msra.gmra.mxu1 %vm3453_vm7, %v2464_v33  ;;  %2474 = vmatprep.subr.msk.bf16.mxu0 %vm156_vm5, %v747_v42 }
 0x132   : > { %772 = vmatpush1.bf16.msra.mxu0 %v752_v41  ;;  %891 = vmatprep.mubr.bf16.mxu1 %v2663_v17 }
 0x135   : > { %2475 = vmatmul.mubr.msk.bf16.vlgmr.msra.gmra.mxu0 %vm3453_vm7, %v2470_v44  ;;  %vm3482_vm7 = vcmp.ne.s16.totalorder %v2922_v51, 0 }
 0x136   : > { %957 = vmatprep.mubr.bf16.mxu0 %v2663_v17 }
 0x163   : > { %v197_v45 = vpop.f32.mrf.mxu0 }
 0x165   : > { %v199_v46 = vpop.f32.mrf.mxu0 }
 0x167   : > { %v201_v52 = vpop.f32.mrf.mxu0 }
 0x169   : > { %v202_v53 = vpop.f32.mrf.mxu0 }
 0x1d9   : > { %v264_v54 = vpop.f32.mrf.mxu1 }
 0x1da   : > { %v265_v24 = vadd.f32 %v264_v54, %v197_v45 }
 0x1db   : > { %v266_v56 = vpop.f32.mrf.mxu1 }
 0x1dc   : > { %v267_v28 = vadd.f32 %v266_v56, %v199_v46 }
 0x1dd   : > { %v268_v57 = vpop.f32.mrf.mxu1  ;;  %v344_v30 = vpop.f32.mrf.mxu0 }
 0x1de   : > { %v351_v23 = vadd.f32 %v344_v30, %v265_v24 }
 0x1df   : > { %v269_v27 = vpop.f32.mrf.mxu1  ;;  %v346_v58 = vpop.f32.mrf.mxu0 }
 0x1e0   : > { %v352_v32 = vadd.f32 %v346_v58, %v267_v28  ;;  %v803_v58 = vpop.permute.xlu0 %802 }
 0x1e1   : > { %v348_v62 = vpop.f32.mrf.mxu0  ;;  %v424_v47 = vpop.f32.mrf.mxu1 }
 0x1e2   : > { %v431_v33 = vadd.f32 %v424_v47, %v351_v23  ;;  %v810_v23 = vpop.permute.xlu1 %809 }
 0x1e3   : > { %v349_v63 = vpop.f32.mrf.mxu0  ;;  %v426_v0 = vpop.f32.mrf.mxu1 }
 0x1e4   : > { %v432_v41 = vadd.f32 %v426_v0, %v352_v32 }
 0x1e5   : > { %v428_v18 = vpop.f32.mrf.mxu1  ;;  %v484_v19 = vpop.f32.mrf.mxu0 }
 0x1e6   : > { %v491_v42 = vadd.f32 %v484_v19, %v431_v33 }
 0x1e7   : > { %v429_v21 = vpop.f32.mrf.mxu1  ;;  %v486_v22 = vpop.f32.mrf.mxu0 }
 0x1e8   : > { %v492_v53 = vadd.f32 %v486_v22, %v432_v41 }
 0x1e9   : > { %v488_v25 = vpop.f32.mrf.mxu0  ;;  %v564_v26 = vpop.f32.mrf.mxu1 }
 0x1ea   : > { %v571_v57 = vadd.f32 %v564_v26, %v491_v42 }
 0x1eb   : > { %v489_v29 = vpop.f32.mrf.mxu0  ;;  %v566_v31 = vpop.f32.mrf.mxu1 }
 0x1ec   : > { %v572_v63 = vadd.f32 %v566_v31, %v492_v53 }
 0x1ed   : > { %v568_v35 = vpop.f32.mrf.mxu1  ;;  %v642_v36 = vpop.f32.mrf.mxu0 }
 0x1ee   : > { %v649_v45 = vadd.f32 %v642_v36, %v571_v57 }
 0x1ef   : > { %v569_v44 = vpop.f32.mrf.mxu1  ;;  %v644_v52 = vpop.f32.mrf.mxu0 }
 0x1f0   : > { %v650_v46 = vadd.f32 %v644_v52, %v572_v63 }
 0x1f1   : > { %v646_v27 = vpop.f32.mrf.mxu0  ;;  %v713_v62 = vpop.f32.mrf.mxu1 }
 0x1f2   : > { %v720_v56 = vadd.f32 %v713_v62, %v649_v45 }
 0x1f3   : > { %v647_v54 = vpop.f32.mrf.mxu0  ;;  %v715_v18 = vpop.f32.mrf.mxu1 }
 0x1f4   : > { %v721_v47 = vadd.f32 %v715_v18, %v650_v46 }
 0x1f5   : > { %v717_v30 = vpop.f32.mrf.mxu1  ;;  %v791_v21 = vpop.f32.mrf.mxu0 }
 0x1f6   : > { %v798_v24 = vadd.f32 %v791_v21, %v720_v56 }
 0x1f7   : > { %v718_v25 = vpop.f32.mrf.mxu1  ;;  %v793_v0 = vpop.f32.mrf.mxu0 }
 0x1f8   : > { %v805_v19 = vmul.f32 %v803_v58, %v798_v24  ;;  %v799_v28 = vadd.f32 %v793_v0, %v721_v47 }
 0x1f9   : > { %v795_v22 = vpop.f32.mrf.mxu0 }
 0x1fa   : > { %v812_v26 = vadd.f32 %v810_v23, %v805_v19  ;;  %v806_v29 = vmul.f32 %v803_v58, %v799_v28 }
 0x1fb   : > { %v796_v32 = vpop.f32.mrf.mxu0 }
 0x1fc   : > { %v813_v31 = vadd.f32 %v810_v23, %v806_v29  ;;  %v814_v33 = vmax.f32 %v812_v26, 0.0 }
 0x1fe   : > { %v815_v35 = vmax.f32 %v813_v31, 0.0 }
 0x200   : > { %v2593_v36 = vpack.c.bf16 %v815_v35, %v814_v33  ;;  %v2520_v35 = vcombine.low %v3027_v60, %v3027_v60 }
 0x202   : > { %824 = vst [vmem:[#allocation2 + $0x4] sm:$0x33] %v2593_v36 }
 0x209   : > { %v825_v41 = vld [vmem:[#allocation2] sm:$0x33]  ;;  %v826_v52 = vld [vmem:[#allocation2 + $0x8] sm:$0x3] }
 0x20a   : > { %v2479_v42 = vcombine.high %v825_v41, %v825_v41  ;;  %v2478_v44 = vcombine.low %v825_v41, %v825_v41  ;;  %v827_v53 = vsel %vm3482_vm7, %v825_v41, 0  ;;  %v2480_v57 = vcombine.low %v826_v52, %v826_v52  ;;  %v1170_v0 = vld [vmem:[#allocation2 + $0x4] sm:$0x33] }
 0x20b   : > { %v2483_v27 = vcombine.low %v827_v53, %v827_v53  ;;  %v828_v62 = vsel %vm2899_vm8, %v826_v52, 0  ;;  %v2484_v63 = vcombine.high %v827_v53, %v827_v53  ;;  %v966_v54 = vsel %vm3483_vm10, %v825_v41, 0  ;;  %v1189_v53 = vpop.permute.xlu1 %1188 }
 0x20c   : > { %842 = vrot.lane.b32.xlu0 %v2479_v42, %s2670_s24  ;;  %840 = vrot.lane.b32.xlu1 %v2478_v44, %s2670_s24  ;;  %v2485_v45 = vcombine.low %v828_v62, %v828_v62  ;;  %v2489_v18 = vcombine.low %v966_v54, %v966_v54  ;;  %v2490_v46 = vcombine.high %v966_v54, %v966_v54  ;;  %v967_v56 = vsel %vm2913_vm11, %v826_v52, 0 }
 0x20d   : > { %vm3484_vm7 = vcmp.ne.s16.totalorder %v2951_v20, 0  ;;  %v2491_v21 = vcombine.low %v967_v56, %v967_v56  ;;  %v1039_v47 = vsel %vm2903_vm9, %v826_v52, 0  ;;  %v2518_v19 = vcombine.low %v1170_v0, %v1170_v0  ;;  %v3162_v52 = vpop.permute.xlu0 %1260 }
 0x20e   : > { %v1038_v30 = vsel %vm3484_vm7, %v825_v41, 0  ;;  %v2497_v25 = vcombine.low %v1039_v47, %v1039_v47  ;;  %v2519_v28 = vcombine.high %v1170_v0, %v1170_v0  ;;  %vm3485_vm10 = vcmp.ne.s16.totalorder %v2974_v34, 0  ;;  %v829_v47 = vld [vmem:[%s3431_s6] sm:$0xf] }
 0x20f   : > { %v2495_v58 = vcombine.low %v1038_v30, %v1038_v30  ;;  %v2496_v24 = vcombine.high %v1038_v30, %v1038_v30  ;;  %v1172_v23 = vsel %vm3485_vm10, %v1170_v0, 0  ;;  %v1244_v29 = vsel %vm3456_vm4, %v1170_v0, 0 }
 0x210   : > { %844 = vrot.lane.b32.xlu1 %v2480_v57, %s2670_s24  ;;  %908 = vrot.lane.b32.xlu0 %v2483_v27, %s2669_s23  ;;  %v2506_v22 = vcombine.low %v1172_v23, %v1172_v23  ;;  %v2507_v26 = vcombine.high %v1172_v23, %v1172_v23  ;;  %v2513_v32 = vcombine.high %v1244_v29, %v1244_v29  ;;  %v1386_v33 = vsel %vm3455_vm3, %v1170_v0, 0 }
 0x211   : > { %v2512_v31 = vcombine.low %v1244_v29, %v1244_v29  ;;  %v2524_v36 = vcombine.low %v1386_v33, %v1386_v33  ;;  %v1387_v41 = vsel %vm3016_vm14, %v3027_v60, 0  ;;  %v2525_v42 = vcombine.high %v1386_v33, %v1386_v33 }
 0x212   : > { %v2526_v44 = vcombine.low %v1387_v41, %v1387_v41  ;;  %vm3486_vm7 = vcmask 130048   ;;  %vm852_vm10 = vcmask 1041408   ;;  %vm848_vm4 = vcmask 31744  }
 0x213   : > { %vm3487_vm3 = vmmov %vm3486_vm7 }
 0x214   : > { %910 = vrot.lane.b32.xlu1 %v2484_v63, %s2669_s23  ;;  %912 = vrot.lane.b32.xlu0 %v2485_v45, %s2669_s23 }
 0x218   : > { %978 = vrot.lane.b32.xlu1 %v2489_v18, %s2668_s22  ;;  %980 = vrot.lane.b32.xlu0 %v2490_v46, %s2668_s22  ;;  %v2477_v18 = vld [vmem:[%s3431_s6 + $0x4] sm:$0xf] }
 0x21c   : > { %982 = vrot.lane.b32.xlu1 %v2491_v21, %s2668_s22  ;;  %1050 = vrot.lane.b32.xlu0 %v2495_v58, %s2667_s1 }
 0x220   : > { %1052 = vrot.lane.b32.xlu1 %v2496_v24, %s2667_s1  ;;  %1054 = vrot.lane.b32.xlu0 %v2497_v25, %s2667_s1 }
 0x224   : > { %1326 = vrot.lane.b32.xlu1 %v2518_v19, %s2671_s25  ;;  %1328 = vrot.lane.b32.xlu0 %v2519_v28, %s2671_s25  ;;  %v1110_v19 = vld [vmem:[#allocation2 + $0x4] sm:$0x33] }
 0x225   : > { %v2502_v29 = vcombine.high %v1110_v19, %v1110_v19 }
 0x228   : > { %1184 = vrot.lane.b32.xlu1 %v2506_v22, %s2665_s0  ;;  %1186 = vrot.lane.b32.xlu0 %v2507_v26, %s2665_s0 }
 0x22c   : > { %1258 = vrot.lane.b32.xlu1 %v2513_v32, %s2666_s21  ;;  %1256 = vrot.lane.b32.xlu0 %v2512_v31, %s2666_s21  ;;  %v2501_v32 = vcombine.low %v1110_v19, %v1110_v19  ;;  %v2488_v31 = vld [vmem:[%s3431_s6 + $0x8] sm:$0xf] }
 0x230   : > { %1330 = vrot.lane.b32.xlu1 %v2520_v35, %s2671_s25  ;;  %1398 = vrot.lane.b32.xlu0 %v2524_v36, %s2664_s30 }
 0x234   : > { %1400 = vrot.lane.b32.xlu1 %v2525_v42, %s2664_s30  ;;  %1402 = vrot.lane.b32.xlu0 %v2526_v44, %s2664_s30  ;;  %v1122_v44 = vsel %vm852_vm10, %v2501_v32, 0 }
 0x238   : > { %1460 = vperm.xlu1 %2631, %v2804_v5   ;;  %1467 = vperm.xlu0 %2630, %v2809_v6  }
 0x27e   : > { %v843_v57 = vpop.permute.xlu0 %842  ;;  %v841_v27 = vpop.permute.xlu1 %840 }
 0x27f   : > { %v846_v60 = vsel %vm3486_vm7, %v841_v27, %v843_v57 }
 0x280   : > { %v854_v54 = vsel %vm852_vm10, %v846_v60, 0 }
 0x282   : > { %v909_v62 = vpop.permute.xlu0 %908  ;;  %v845_v63 = vpop.permute.xlu1 %844 }
 0x283   : > { %v847_v45 = vsel %vm3487_vm3, %v843_v57, %v845_v63  ;;  %vm3488_vm3 = vcmask 7168   ;;  %v2494_v57 = vld [vmem:[%s3431_s6 + $0xc] sm:$0xf] }
 0x284   : > { %2481 = vmatprep.subr.msk.bf16.mxu1 %vm852_vm10, %v847_v45  ;;  %vm3489_vm7 = vmmov %vm3488_vm3 }
 0x285   : > { %874 = vmatpush1.bf16.msra.mxu1 %v854_v54 }
 0x286   : > { %v913_v46 = vpop.permute.xlu0 %912  ;;  %v911_v56 = vpop.permute.xlu1 %910 }
 0x287   : > { %v914_v30 = vsel %vm218_vm6, %v909_v62, %v911_v56  ;;  %v915_v21 = vsel %vm218_vm6, %v911_v56, %v913_v46  ;;  %v2500_v62 = vld [vmem:[%s3431_s6 + $0x10] sm:$0xf]  ;;  %v2505_v56 = vld [vmem:[%s3431_s6 + $0x14] sm:$0xf] }
 0x288   : > { %v920_v58 = vsel %vm852_vm10, %v914_v30, 0  ;;  %2482 = vmatmul.mubr.msk.bf16.vlgmr.msra.gmra.mxu1 %vm848_vm4, %v2477_v18  ;;  %2486 = vmatprep.subr.msk.bf16.mxu0 %vm852_vm10, %v915_v21 }
 0x289   : > { %940 = vmatpush1.bf16.msra.mxu0 %v920_v58  ;;  %1027 = vmatprep.mubr.bf16.mxu1 %v2663_v17 }
 0x28a   : > { %v981_v24 = vpop.permute.xlu0 %980  ;;  %v979_v25 = vpop.permute.xlu1 %978 }
 0x28b   : > { %v984_v0 = vsel %vm298_vm1, %v979_v25, %v981_v24  ;;  %v2511_v25 = vld [vmem:[%s3431_s6 + $0x18] sm:$0xf] }
 0x28c   : > { %2487 = vmatmul.mubr.msk.bf16.vlgmr.msra.gmra.mxu0 %vm848_vm4, %v829_v47  ;;  %v990_v26 = vsel %vm852_vm10, %v984_v0, 0 }
 0x28d   : > { %1099 = vmatprep.mubr.bf16.mxu0 %v2663_v17 }
 0x28e   : > { %v1051_v28 = vpop.permute.xlu0 %1050  ;;  %v983_v23 = vpop.permute.xlu1 %982 }
 0x28f   : > { %v985_v22 = vsel %vm298_vm1, %v981_v24, %v983_v23  ;;  %v2517_v23 = vld [vmem:[%s3431_s6 + $0x1c] sm:$0xf] }
 0x290   : > { %2492 = vmatprep.subr.msk.bf16.mxu1 %vm852_vm10, %v985_v22 }
 0x291   : > { %1010 = vmatpush1.bf16.msra.mxu1 %v990_v26 }
 0x292   : > { %v1055_v33 = vpop.permute.xlu0 %1054  ;;  %2503 = vmatprep.subr.msk.bf16.mxu1 %vm852_vm10, %v2502_v29  ;;  %v1053_v35 = vpop.permute.xlu1 %1052 }
 0x293   : > { %v1056_v36 = vsel %vm3488_vm3, %v1051_v28, %v1053_v35  ;;  %v1057_v41 = vsel %vm3489_vm7, %v1053_v35, %v1055_v33  ;;  %vm3490_vm3 = vcmask 908288   ;;  %v2523_v33 = vld [vmem:[%s3431_s6 + $0x20] sm:$0xf] }
 0x294   : > { %v1062_v42 = vsel %vm852_vm10, %v1056_v36, 0  ;;  %2493 = vmatmul.mubr.msk.bf16.vlgmr.msra.gmra.mxu1 %vm848_vm4, %v2488_v31  ;;  %2498 = vmatprep.subr.msk.bf16.mxu0 %vm852_vm10, %v1057_v41  ;;  %vm3491_vm7 = vmmov %vm3490_vm3 }
 0x295   : > { %1082 = vmatpush1.bf16.msra.mxu0 %v1062_v42  ;;  %1142 = vmatpush1.bf16.msra.mxu1 %v1122_v44 }
 0x296   : > { %v1329_v27 = vpop.permute.xlu0 %1328  ;;  %v1327_v60 = vpop.permute.xlu1 %1326  ;;  %1159 = vmatprep.mubr.bf16.mxu1 %v2663_v17 }
 0x297   : > { %v1332_v24 = vsel %vm3457_vm0, %v1327_v60, %v1329_v27 }
 0x298   : > { %2499 = vmatmul.mubr.msk.bf16.vlgmr.msra.gmra.mxu0 %vm848_vm4, %v2494_v57 }
 0x299   : > { %1233 = vmatprep.mubr.bf16.mxu0 %v2663_v17 }
 0x29a   : > { %v1187_v63 = vpop.permute.xlu0 %1186  ;;  %v1185_v45 = vpop.permute.xlu1 %1184 }
 0x29b   : > { %v1191_v54 = vsel %vm356_vm2, %v1187_v63, %v1189_v53  ;;  %v1190_v18 = vsel %vm356_vm2, %v1185_v45, %v1187_v63 }
 0x29c   : > { %v1196_v46 = vsel %vm852_vm10, %v1190_v18, 0  ;;  %2504 = vmatmul.mubr.msk.bf16.vlgmr.msra.gmra.mxu1 %vm848_vm4, %v2500_v62  ;;  %2509 = vmatprep.subr.msk.bf16.mxu0 %vm852_vm10, %v1191_v54 }
 0x29d   : > { %1216 = vmatpush1.bf16.msra.mxu0 %v1196_v46  ;;  %1305 = vmatprep.mubr.bf16.mxu1 %v2663_v17 }
 0x29e   : > { %v1257_v30 = vpop.permute.xlu0 %1256  ;;  %v1259_v21 = vpop.permute.xlu1 %1258 }
 0x29f   : > { %v1262_v58 = vsel %vm276_vm13, %v1257_v30, %v1259_v21  ;;  %v1263_v53 = vsel %vm276_vm13, %v1259_v21, %v3162_v52  ;;  %v1338_v52 = vsel %vm852_vm10, %v1332_v24, 0 }
 0x2a0   : > { %v1268_v47 = vsel %vm852_vm10, %v1262_v58, 0  ;;  %2510 = vmatmul.mubr.msk.bf16.vlgmr.msra.gmra.mxu0 %vm848_vm4, %v2505_v56  ;;  %2515 = vmatprep.subr.msk.bf16.mxu1 %vm852_vm10, %v1263_v53 }
 0x2a1   : > { %1288 = vmatpush1.bf16.msra.mxu1 %v1268_v47  ;;  %1375 = vmatprep.mubr.bf16.mxu0 %v2663_v17 }
 0x2a2   : > { %v1399_v0 = vpop.permute.xlu0 %1398  ;;  %v1331_v19 = vpop.permute.xlu1 %1330 }
 0x2a3   : > { %v1333_v28 = vsel %vm3457_vm0, %v1329_v27, %v1331_v19  ;;  %vm1637_vm0 = vcmask 15360  }
 0x2a4   : > { %2516 = vmatmul.mubr.msk.bf16.vlgmr.msra.gmra.mxu1 %vm848_vm4, %v2511_v25  ;;  %2521 = vmatprep.subr.msk.bf16.mxu0 %vm852_vm10, %v1333_v28 }
 0x2a5   : > { %1358 = vmatpush1.bf16.msra.mxu0 %v1338_v52  ;;  %1447 = vmatprep.mubr.bf16.mxu1 %v2663_v17 }
 0x2a6   : > { %v1403_v22 = vpop.permute.xlu0 %1402  ;;  %v1401_v26 = vpop.permute.xlu1 %1400  ;;  %2531 = vmatprep.subr.msk.bf16.mxu0 %vm156_vm5, %v2989_v38 }
 0x2a7   : > { %v1404_v29 = vsel %vm3490_vm3, %v1399_v0, %v1401_v26  ;;  %v1405_v32 = vsel %vm3491_vm7, %v1401_v26, %v1403_v22  ;;  %vm3492_vm3 = vcmask 64512  }
 0x2a8   : > { %v1410_v31 = vsel %vm852_vm10, %v1404_v29, 0  ;;  %2522 = vmatmul.mubr.msk.bf16.vlgmr.msra.gmra.mxu0 %vm848_vm4, %v2517_v23  ;;  %2527 = vmatprep.subr.msk.bf16.mxu1 %vm852_vm10, %v1405_v32 }
 0x2a9   : > { %1430 = vmatpush1.bf16.msra.mxu1 %v1410_v31  ;;  %1501 = vmatpush1.bf16.msra.mxu0 %v3061_v48 }
 0x2aa   : > { %1518 = vmatprep.mubr.bf16.mxu0 %v2663_v17 }
 0x2ac   : > { %2528 = vmatmul.mubr.msk.bf16.vlgmr.msra.gmra.mxu1 %vm848_vm4, %v2523_v33  ;;  %vm2673_vm4 = vmmov 0  }
 0x2b0   : > { %2532 = vmatmul.mubr.msk.bf16.vlgmr.msra.gmra.mxu0 %vm3492_vm3, %v2834_v11 }
 0x2b1   : > { %1813 = vmatprep.mubr.bf16.mxu0 %v2663_v17 }
 0x348   : > { %v893_v38 = vpop.f32.mrf.mxu1 }
 0x34a   : > { %v895_v35 = vpop.f32.mrf.mxu1 }
 0x34c   : > { %v897_v36 = vpop.f32.mrf.mxu1  ;;  %v959_v41 = vpop.f32.mrf.mxu0 }
 0x34d   : > { %v960_v21 = vadd.f32 %v959_v41, %v893_v38 }
 0x34e   : > { %v898_v42 = vpop.f32.mrf.mxu1  ;;  %v961_v44 = vpop.f32.mrf.mxu0 }
 0x34f   : > { %v962_v47 = vadd.f32 %v961_v44, %v895_v35 }
 0x350   : > { %v963_v57 = vpop.f32.mrf.mxu0 }
 0x352   : > { %v964_v27 = vpop.f32.mrf.mxu0 }
 0x354   : > { %v1029_v60 = vpop.f32.mrf.mxu1 }
 0x355   : > { %v1036_v24 = vadd.f32 %v1029_v60, %v960_v21 }
 0x356   : > { %v1031_v62 = vpop.f32.mrf.mxu1 }
 0x357   : > { %v1037_v19 = vadd.f32 %v1031_v62, %v962_v47  ;;  %v1461_v62 = vpop.permute.xlu1 %1460 }
 0x358   : > { %v1033_v48 = vpop.f32.mrf.mxu1  ;;  %v1101_v63 = vpop.f32.mrf.mxu0 }
 0x359   : > { %v1108_v28 = vadd.f32 %v1101_v63, %v1036_v24 }
 0x35a   : > { %v1034_v45 = vpop.f32.mrf.mxu1  ;;  %v1103_v54 = vpop.f32.mrf.mxu0 }
 0x35b   : > { %v1109_v22 = vadd.f32 %v1103_v54, %v1037_v19  ;;  %v2672_v19 = vmov 0.0  }
 0x35c   : > { %v1105_v18 = vpop.f32.mrf.mxu0  ;;  %v1161_v46 = vpop.f32.mrf.mxu1  ;;  %2600 = vmatprep.subr.mxu1 %v2672_v19  ;;  %2602 = vmatprep.mubr.msk.f32.mxu1 %vm2673_vm4, %v2672_v19 }
 0x35d   : > { %v1168_v26 = vadd.f32 %v1161_v46, %v1108_v28 }
 0x35e   : > { %v1106_v56 = vpop.f32.mrf.mxu0  ;;  %v1163_v30 = vpop.f32.mrf.mxu1 }
 0x35f   : > { %v1169_v31 = vadd.f32 %v1163_v30, %v1109_v22 }
 0x360   : > { %v1165_v58 = vpop.f32.mrf.mxu1  ;;  %v1235_v53 = vpop.f32.mrf.mxu0 }
 0x361   : > { %v1242_v33 = vadd.f32 %v1235_v53, %v1168_v26  ;;  %v1468_v58 = vpop.permute.xlu0 %1467  ;;  %v1550_v26 = vand.u32 127, %v98_v16 }
 0x362   : > { %v1166_v25 = vpop.f32.mrf.mxu1  ;;  %v1237_v0 = vpop.f32.mrf.mxu0 }
 0x363   : > { %v1243_v57 = vadd.f32 %v1237_v0, %v1169_v31  ;;  %vm1551_vm7 = vcmp.eq.s32.totalorder %v1550_v26, 0 }
 0x364   : > { %v1239_v52 = vpop.f32.mrf.mxu0  ;;  %v1307_v23 = vpop.f32.mrf.mxu1 }
 0x365   : > { %v1314_v38 = vadd.f32 %v1307_v23, %v1242_v33 }
 0x366   : > { %v1240_v29 = vpop.f32.mrf.mxu0  ;;  %v1309_v32 = vpop.f32.mrf.mxu1 }
 0x367   : > { %v1315_v35 = vadd.f32 %v1309_v32, %v1243_v57 }
 0x368   : > { %v1311_v36 = vpop.f32.mrf.mxu1  ;;  %v1377_v42 = vpop.f32.mrf.mxu0 }
 0x369   : > { %v1384_v44 = vadd.f32 %v1377_v42, %v1314_v38 }
 0x36a   : > { %v1312_v41 = vpop.f32.mrf.mxu1  ;;  %v1379_v27 = vpop.f32.mrf.mxu0 }
 0x36b   : > { %v1385_v63 = vadd.f32 %v1379_v27, %v1315_v35 }
 0x36c   : > { %v1381_v60 = vpop.f32.mrf.mxu0  ;;  %v1449_v48 = vpop.f32.mrf.mxu1 }
 0x36d   : > { %v1456_v45 = vadd.f32 %v1449_v48, %v1384_v44 }
 0x36e   : > { %v1382_v18 = vpop.f32.mrf.mxu0  ;;  %v1451_v54 = vpop.f32.mrf.mxu1 }
 0x36f   : > { %v1463_v46 = vmul.f32 %v1461_v62, %v1456_v45  ;;  %v1457_v56 = vadd.f32 %v1451_v54, %v1385_v63  ;;  %v3269_v45 = vld [vmem:[#allocation2 + $0xc] sm:$0xf] }
 0x370   : > { %v1453_v21 = vpop.f32.mrf.mxu1  ;;  %v1520_v28 = vpop.f32.mrf.mxu0  ;;  %v2095_v18 = vsel %vm2917_vm12, %v3269_v45, 0  ;;  %vm3494_vm12 = vcmp.ne.s16.totalorder %v2922_v51, 0 }
 0x371   : > { %v1464_v30 = vmul.f32 %v1461_v62, %v1457_v56  ;;  %v3249_v47 = vadd.f32 %v1468_v58, %v1463_v46  ;;  %v2570_v54 = vcombine.low %v2095_v18, %v2095_v18  ;;  %v2167_v21 = vsel %vm2933_vm15, %v3269_v45, 0 }
 0x372   : > { %v1454_v53 = vpop.f32.mrf.mxu1  ;;  %v1522_v52 = vpop.f32.mrf.mxu0  ;;  %v2576_v50 = vcombine.low %v2167_v21, %v2167_v21  ;;  %vm3495_vm15 = vcmp.ne.s16.totalorder %v2939_v61, 0 }
 0x373   : > { %v3251_v24 = vadd.f32 %v1468_v58, %v1464_v30 }
 0x374   : > { %v1524_v23 = vpop.f32.mrf.mxu0 }
 0x375   : > { %v1546_v25 = vmax.f32 %v3249_v47, %v3251_v24  ;;  %v1541_v0 = vadd.f32 %v3251_v24, %v3249_v47 }
 0x376   : > { %v1525_v22 = vpop.f32.mrf.mxu0 }
 0x377   : > { %1547 = vmax.xlane.f32.xlu0 %v1546_v25  ;;  %1542 = vadd.xlane.f32.xlu1 %v1541_v0 }
 0x388   : > { %1634 = vperm.xlu1 %2631, %v2854_v15  }
 0x38d   : > { %1555 = vperm.xlu0 %2630, %v2844_v13  }
 0x391   : > { %1529 = vperm.xlu0 %2630, %v2824_v9  }
 0x400   : > { %v1543_v29 = vpop.xlane.xlu1 %1542  ;;  %v1548_v31 = vpop.xlane.xlu0 %1547 }
 0x401   : > { %v1545_v32 = vmul.f32 0.00390625, %v1543_v29 }
 0x403   : > { %v1552_v33 = vsel %vm1551_vm7, %v1545_v32, %v1548_v31  ;;  %vm3502_vm7 = vmmov %vm3492_vm3 }
 0x404   : > { %2601 = vmatpush3.msra.mxu1 %v1552_v33  ;;  %v1635_v16 = vpop.permute.xlu1 %1634 }
 0x405   : > { %2603 = vmatmul.mubr.msk.f32.vlgmr.msra.gmra.mxu1 %vm3492_vm3, %v2839_v12  ;;  %2605 = vmatprep.subr.mxu1 %v2672_v19 }
 0x406   : > { %2607 = vmatprep.mubr.msk.f32.mxu1 %vm2673_vm4, %v2672_v19 }
 0x408   : > { %v1556_v36 = vpop.permute.xlu0 %1555 }
 0x40c   : > { %v1530_v30 = vpop.permute.xlu0 %1529 }
 0x40d   : > { %v1532_v53 = vmul.f32 %v1530_v30, %v1520_v28  ;;  %v1533_v25 = vmul.f32 %v1530_v30, %v1522_v52 }
 0x4c5   : > { %v1627_v42 = vpop.f32.mrf.mxu1 }
 0x4c6   : > { %v1628_v57 = vadd.f32 %v1627_v42, %v1556_v36 }
 0x4c7   : > { %v2604_v38 = vpop.f32.mrf.mxu1 }
 0x4c8   : > { %v1631_v41 = vmax.f32 %v1628_v57, 0.0 }
 0x4ca   : > { %2606 = vmatpush3.msk.msra.mxu1 %vm852_vm10, %v1631_v41  ;;  %vm3499_vm10 = vcmp.ne.s16.totalorder %v3002_v43, 0 }
 0x4cb   : > { %2608 = vmatmul.mubr.msk.f32.vlgmr.msra.gmra.mxu1 %vm1637_vm0, %v2849_v14  ;;  %vm3493_vm0 = vcmask 7168  }
 0x4cc   : > { %1879 = vmatprep.mubr.bf16.mxu1 %v2663_v17 }
 0x58b   : > { %v1710_v27 = vpop.f32.mrf.mxu1 }
 0x58c   : > { %v1711_v35 = vadd.f32 %v1710_v27, %v1635_v16 }
 0x58d   : > { %v2609_v44 = vpop.f32.mrf.mxu1 }
 0x58e   : > { %v2536_v60 = vmul.f32 -1.442695, %v1711_v35 }
 0x590   : > { %2648 = vpow2.f32 %v2536_v60 }
 0x59d   : > { %v2649_v48 = vpop.eup %2648 }
 0x59e   : > { %v1717_v62 = vadd.f32 1.0, %v2649_v48 }
 0x5a0   : > { %2650 = vrcp.f32 %v1717_v62 }
 0x5ad   : > { %v2651_v63 = vpop.eup %2650 }
 0x5ae   : > { %1721 = vrot.lane.b32.xlu1 %v2651_v63, %s2665_s0 }
 0x5b2   : > { %1536 = vperm.xlu1 %2631, %v2829_v10  }
 0x5b6   : > { %2110 = vrot.lane.b32.xlu1 %v2570_v54, %s2665_s0 }
 0x620   : > { %v1722_v46 = vpop.permute.xlu1 %1721 }
 0x621   : > { %v1724_v56 = vadd.f32 %v2651_v63, %v1722_v46 }
 0x623   : > { %1728 = vst.msk [vmem:[%s1726_s18] sm:$0xff] %vm3493_vm0, %v1724_v56  ;;  %1731 = vperm.xlu0 %2630, %v1724_v56  }
 0x627   : > { %2182 = vrot.lane.b32.xlu0 %v2576_v50, %s2666_s21  ;;  %v2582_v50 = vcombine.low %v3269_v45, %v3269_v45 }
 0x62d   : > { %v1537_v58 = vpop.permute.xlu1 %1536 }
 0x62e   : > { %v1539_v19 = vadd.f32 %v1537_v58, %v1532_v53  ;;  %v1540_v23 = vadd.f32 %v1537_v58, %v1533_v25 }
 0x631   : > { %v2111_v43 = vpop.permute.xlu1 %2110 }
 0x69e   : > { %v1732_v0 = vpop.permute.xlu0 %1731 }
 0x69f   : > { %v1734_v22 = vmul.f32 %v1732_v0, %v3249_v47  ;;  %v1735_v26 = vmul.f32 %v1732_v0, %v3251_v24 }
 0x6a1   : > { %v1736_v29 = vadd.f32 %v1734_v22, %v1539_v19  ;;  %v1737_v59 = vadd.f32 %v1735_v26, %v1540_v23 }
 0x6a2   : > { %v3337_v25 = vpop.permute.xlu0 %2182 }
 0x6a3   : > { %v1738_v32 = vmax.f32 %v1736_v29, 0.0  ;;  %v1739_v31 = vmax.f32 %v1737_v59, 0.0  ;;  %v2539_v29 = vld [vmem:[%s3435_s16 + $0x2] sm:$0x3] }
 0x6a5   : > { %v2594_v33 = vpack.c.bf16 %v1739_v31, %v1738_v32  ;;  %v3311_v49 = vpack.c.bf16 %v1738_v32, %v1738_v32 }
 0x6a7   : > { %1748 = vst [vmem:[#allocation2 + $0x4] sm:$0xff] %v2594_v33 }
 0x6ae   : > { %v1749_v36 = vld [vmem:[#allocation2] sm:$0xff]  ;;  %v1750_v38 = vld [vmem:[#allocation2 + $0x8] sm:$0xf] }
 0x6af   : > { %v2541_v42 = vcombine.high %v1749_v36, %v1749_v36  ;;  %v2540_v57 = vcombine.low %v1749_v36, %v1749_v36  ;;  %v1751_v28 = vsel %vm3494_vm12, %v1749_v36, 0  ;;  %v2542_v47 = vcombine.low %v1750_v38, %v1750_v38 }
 0x6b0   : > { %v2545_v52 = vcombine.low %v1751_v28, %v1751_v28  ;;  %v1752_v24 = vsel %vm2899_vm8, %v1750_v38, 0  ;;  %v2546_v41 = vcombine.high %v1751_v28, %v1751_v28  ;;  %v1888_v27 = vsel %vm3495_vm15, %v1749_v36, 0 }
 0x6b1   : > { %1766 = vrot.lane.b32.xlu0 %v2541_v42, %s2670_s24  ;;  %1764 = vrot.lane.b32.xlu1 %v2540_v57, %s2670_s24  ;;  %v2547_v16 = vcombine.low %v1752_v24, %v1752_v24  ;;  %v2551_v51 = vcombine.low %v1888_v27, %v1888_v27  ;;  %v2552_v35 = vcombine.high %v1888_v27, %v1888_v27  ;;  %v1889_v44 = vsel %vm2913_vm11, %v1750_v38, 0  ;;  %v1753_v42 = vld [vmem:[%s3435_s16] sm:$0x3] }
 0x6b2   : > { %vm3496_vm8 = vcmp.ne.s16.totalorder %v2951_v20, 0  ;;  %v2553_v60 = vcombine.low %v1889_v44, %v1889_v44  ;;  %v1961_v61 = vsel %vm2903_vm9, %v1750_v38, 0  ;;  %v2653_v20 = vpack.c.bf16 %v1739_v31, %v1739_v31 }
 0x6b3   : > { %v1960_v39 = vsel %vm3496_vm8, %v1749_v36, 0  ;;  %v2559_v63 = vcombine.low %v1961_v61, %v1961_v61  ;;  %vm3497_vm11 = vcmp.ne.s16.totalorder %v2974_v34, 0  ;;  %vm3498_vm9 = vcmp.ne.s16.totalorder %v2984_v37, 0 }
 0x6b4   : > { %v2557_v48 = vcombine.low %v1960_v39, %v1960_v39  ;;  %v2558_v62 = vcombine.high %v1960_v39, %v1960_v39  ;;  %v2094_v18 = vsel %vm3497_vm11, %v2594_v33, 0  ;;  %v2166_v46 = vsel %vm3498_vm9, %v2594_v33, 0 }
 0x6b5   : > { %1768 = vrot.lane.b32.xlu1 %v2542_v47, %s2670_s24  ;;  %1830 = vrot.lane.b32.xlu0 %v2545_v52, %s2669_s23  ;;  %v2568_v40 = vcombine.low %v2094_v18, %v2094_v18  ;;  %v2569_v54 = vcombine.high %v2094_v18, %v2094_v18  ;;  %v2575_v56 = vcombine.high %v2166_v46, %v2166_v46  ;;  %v2308_v34 = vsel %vm3499_vm10, %v2594_v33, 0 }
 0x6b6   : > { %v2574_v21 = vcombine.low %v2166_v46, %v2166_v46  ;;  %v2586_v30 = vcombine.low %v2308_v34, %v2308_v34  ;;  %v2309_v37 = vsel %vm3016_vm14, %v3269_v45, 0  ;;  %v2587_v58 = vcombine.high %v2308_v34, %v2308_v34  ;;  %v2567_v46 = vld [vmem:[%s3435_s16 + $0xa] sm:$0x3] }
 0x6b7   : > { %v2588_v53 = vcombine.low %v2309_v37, %v2309_v37  ;;  %vm3500_vm14 = vcmask 130048   ;;  %vm3508_vm8 = vcmask 916480   ;;  %vm3511_vm9 = vcmask 908288  }
 0x6b8   : > { %vm3501_vm4 = vmmov %vm3500_vm14 }
 0x6b9   : > { %1832 = vrot.lane.b32.xlu1 %v2546_v41, %s2669_s23  ;;  %1834 = vrot.lane.b32.xlu0 %v2547_v16, %s2669_s23  ;;  %v2550_v16 = vld [vmem:[%s3435_s16 + $0x4] sm:$0x3]  ;;  %vm3509_vm11 = vmmov %vm3508_vm8 }
 0x6ba   : > { %vm3512_vm10 = vmmov %vm3511_vm9 }
 0x6bd   : > { %1900 = vrot.lane.b32.xlu1 %v2551_v51, %s2668_s22  ;;  %1902 = vrot.lane.b32.xlu0 %v2552_v35, %s2668_s22 }
 0x6c1   : > { %1904 = vrot.lane.b32.xlu1 %v2553_v60, %s2668_s22  ;;  %1972 = vrot.lane.b32.xlu0 %v2557_v48, %s2667_s1  ;;  %v2044_v60 = vsel %vm156_vm5, %v3311_v49, 0  ;;  %v2556_v48 = vld [vmem:[%s3435_s16 + $0x6] sm:$0x3] }
 0x6c5   : > { %1974 = vrot.lane.b32.xlu1 %v2558_v62, %s2667_s1  ;;  %1976 = vrot.lane.b32.xlu0 %v2559_v63, %s2667_s1  ;;  %v2562_v63 = vld [vmem:[%s3435_s16 + $0x8] sm:$0x3] }
 0x6c9   : > { %2248 = vrot.lane.b32.xlu1 %v3311_v49, %s2671_s25  ;;  %2250 = vrot.lane.b32.xlu0 %v2653_v20, %s2671_s25 }
 0x6cd   : > { %2106 = vrot.lane.b32.xlu1 %v2568_v40, %s2665_s0  ;;  %2108 = vrot.lane.b32.xlu0 %v2569_v54, %s2665_s0 }
 0x6d1   : > { %2180 = vrot.lane.b32.xlu1 %v2575_v56, %s2666_s21  ;;  %2178 = vrot.lane.b32.xlu0 %v2574_v21, %s2666_s21 }
 0x6d5   : > { %2252 = vrot.lane.b32.xlu1 %v2582_v50, %s2671_s25  ;;  %2320 = vrot.lane.b32.xlu0 %v2586_v30, %s2664_s30 }
 0x6d9   : > { %2322 = vrot.lane.b32.xlu1 %v2587_v58, %s2664_s30  ;;  %2324 = vrot.lane.b32.xlu0 %v2588_v53, %s2664_s30  ;;  %v2573_v58 = vld [vmem:[%s3435_s16 + $0xc] sm:$0x3] }
 0x6dd   : > { %2382 = vperm.xlu1 %2631, %v2814_v7   ;;  %2389 = vperm.xlu0 %2630, %v2819_v8  }
 0x723   : > { %v1767_v0 = vpop.permute.xlu0 %1766  ;;  %v1765_v55 = vpop.permute.xlu1 %1764 }
 0x724   : > { %v1770_v45 = vsel %vm3500_vm14, %v1765_v55, %v1767_v0  ;;  %v2579_v55 = vld [vmem:[%s3435_s16 + $0xe] sm:$0x3] }
 0x725   : > { %v1776_v26 = vsel %vm156_vm5, %v1770_v45, 0 }
 0x727   : > { %v1831_v19 = vpop.permute.xlu0 %1830  ;;  %v1769_v23 = vpop.permute.xlu1 %1768 }
 0x728   : > { %v1771_v22 = vsel %vm3501_vm4, %v1767_v0, %v1769_v23 }
 0x729   : > { %2543 = vmatprep.subr.msk.bf16.mxu0 %vm156_vm5, %v1771_v22 }
 0x72a   : > { %1796 = vmatpush1.bf16.msra.mxu0 %v1776_v26 }
 0x72b   : > { %v1835_v59 = vpop.permute.xlu0 %1834  ;;  %v1833_v32 = vpop.permute.xlu1 %1832 }
 0x72c   : > { %v1836_v31 = vsel %vm218_vm6, %v1831_v19, %v1833_v32  ;;  %v1837_v33 = vsel %vm218_vm6, %v1833_v32, %v1835_v59  ;;  %vm3503_vm6 = vmmov %vm3493_vm0 }
 0x72d   : > { %v1842_v36 = vsel %vm156_vm5, %v1836_v31, 0  ;;  %2548 = vmatprep.subr.msk.bf16.mxu1 %vm156_vm5, %v1837_v33  ;;  %2544 = vmatmul.mubr.msk.bf16.vlgmr.msra.gmra.mxu0 %vm3502_vm7, %v2539_v29  ;;  %v2585_v29 = vld [vmem:[%s3435_s16 + $0x10] sm:$0x3] }
 0x72e   : > { %1862 = vmatpush1.bf16.msra.mxu1 %v1842_v36  ;;  %1949 = vmatprep.mubr.bf16.mxu0 %v2663_v17 }
 0x72f   : > { %v1903_v57 = vpop.permute.xlu0 %1902  ;;  %v1901_v38 = vpop.permute.xlu1 %1900 }
 0x730   : > { %v1906_v28 = vsel %vm298_vm1, %v1901_v38, %v1903_v57 }
 0x731   : > { %2549 = vmatmul.mubr.msk.bf16.vlgmr.msra.gmra.mxu1 %vm3492_vm3, %v1753_v42  ;;  %v1912_v41 = vsel %vm156_vm5, %v1906_v28, 0 }
 0x732   : > { %2021 = vmatprep.mubr.bf16.mxu1 %v2663_v17 }
 0x733   : > { %v1973_v47 = vpop.permute.xlu0 %1972  ;;  %v1905_v52 = vpop.permute.xlu1 %1904 }
 0x734   : > { %v1907_v24 = vsel %vm298_vm1, %v1903_v57, %v1905_v52  ;;  %vm3504_vm1 = vmmov %vm3492_vm3 }
 0x735   : > { %2554 = vmatprep.subr.msk.bf16.mxu0 %vm156_vm5, %v1907_v24  ;;  %vm3505_vm12 = vmmov %vm3504_vm1 }
 0x736   : > { %1932 = vmatpush1.bf16.msra.mxu0 %v1912_v41  ;;  %vm3506_vm15 = vmmov %vm3504_vm1 }
 0x737   : > { %v1977_v27 = vpop.permute.xlu0 %1976  ;;  %2565 = vmatprep.subr.msk.bf16.mxu0 %vm156_vm5, %v2653_v20  ;;  %v1975_v51 = vpop.permute.xlu1 %1974  ;;  %vm3513_vm14 = vmmov %vm3504_vm1 }
 0x738   : > { %v1978_v35 = vsel %vm3503_vm6, %v1973_v47, %v1975_v51  ;;  %v1979_v44 = vsel %vm3493_vm0, %v1975_v51, %v1977_v27  ;;  %vm3514_vm4 = vmmov %vm3504_vm1 }
 0x739   : > { %v1984_v39 = vsel %vm156_vm5, %v1978_v35, 0  ;;  %2555 = vmatmul.mubr.msk.bf16.vlgmr.msra.gmra.mxu0 %vm3504_vm1, %v2550_v16  ;;  %2560 = vmatprep.subr.msk.bf16.mxu1 %vm156_vm5, %v1979_v44 }
 0x73a   : > { %2004 = vmatpush1.bf16.msra.mxu1 %v1984_v39  ;;  %2064 = vmatpush1.bf16.msra.mxu0 %v2044_v60 }
 0x73b   : > { %v2251_v61 = vpop.permute.xlu0 %2250  ;;  %v2249_v62 = vpop.permute.xlu1 %2248  ;;  %2081 = vmatprep.mubr.bf16.mxu0 %v2663_v17 }
 0x73c   : > { %v2254_v37 = vsel %vm3508_vm8, %v2249_v62, %v2251_v61 }
 0x73d   : > { %2561 = vmatmul.mubr.msk.bf16.vlgmr.msra.gmra.mxu1 %vm3505_vm12, %v2556_v48 }
 0x73e   : > { %2155 = vmatprep.mubr.bf16.mxu1 %v2663_v17 }
 0x73f   : > { %v2109_v20 = vpop.permute.xlu0 %2108  ;;  %v2107_v49 = vpop.permute.xlu1 %2106 }
 0x740   : > { %v2113_v18 = vsel %vm356_vm2, %v2109_v20, %v2111_v43  ;;  %v2112_v40 = vsel %vm356_vm2, %v2107_v49, %v2109_v20  ;;  %vm3507_vm2 = vmmov %vm3504_vm1 }
 0x741   : > { %v2118_v54 = vsel %vm156_vm5, %v2112_v40, 0  ;;  %2566 = vmatmul.mubr.msk.bf16.vlgmr.msra.gmra.mxu0 %vm3506_vm15, %v2562_v63  ;;  %2571 = vmatprep.subr.msk.bf16.mxu1 %vm156_vm5, %v2113_v18 }
 0x742   : > { %2138 = vmatpush1.bf16.msra.mxu1 %v2118_v54  ;;  %2227 = vmatprep.mubr.bf16.mxu0 %v2663_v17 }
 0x743   : > { %v2179_v56 = vpop.permute.xlu0 %2178  ;;  %v2181_v21 = vpop.permute.xlu1 %2180 }
 0x744   : > { %v2184_v34 = vsel %vm276_vm13, %v2179_v56, %v2181_v21  ;;  %v2185_v50 = vsel %vm276_vm13, %v2181_v21, %v3337_v25  ;;  %v2260_v25 = vsel %vm156_vm5, %v2254_v37, 0  ;;  %vm3510_vm13 = vmmov %vm3504_vm1 }
 0x745   : > { %v2190_v30 = vsel %vm156_vm5, %v2184_v34, 0  ;;  %2572 = vmatmul.mubr.msk.bf16.vlgmr.msra.gmra.mxu1 %vm3507_vm2, %v2567_v46  ;;  %2577 = vmatprep.subr.msk.bf16.mxu0 %vm156_vm5, %v2185_v50 }
 0x746   : > { %2210 = vmatpush1.bf16.msra.mxu0 %v2190_v30  ;;  %2297 = vmatprep.mubr.bf16.mxu1 %v2663_v17 }
 0x747   : > { %v2321_v53 = vpop.permute.xlu0 %2320  ;;  %v2253_v43 = vpop.permute.xlu1 %2252 }
 0x748   : > { %v2255_v0 = vsel %vm3509_vm11, %v2251_v61, %v2253_v43 }
 0x749   : > { %2578 = vmatmul.mubr.msk.bf16.vlgmr.msra.gmra.mxu0 %vm3510_vm13, %v2573_v58  ;;  %2583 = vmatprep.subr.msk.bf16.mxu1 %vm156_vm5, %v2255_v0 }
 0x74a   : > { %2280 = vmatpush1.bf16.msra.mxu1 %v2260_v25  ;;  %2369 = vmatprep.mubr.bf16.mxu0 %v2663_v17 }
 0x74b   : > { %v2325_v45 = vpop.permute.xlu0 %2324  ;;  %v2323_v19 = vpop.permute.xlu1 %2322 }
 0x74c   : > { %v2326_v23 = vsel %vm3511_vm9, %v2321_v53, %v2323_v19  ;;  %v2327_v22 = vsel %vm3512_vm10, %v2323_v19, %v2325_v45 }
 0x74d   : > { %v2332_v26 = vsel %vm156_vm5, %v2326_v23, 0  ;;  %2584 = vmatmul.mubr.msk.bf16.vlgmr.msra.gmra.mxu1 %vm3513_vm14, %v2579_v55  ;;  %2589 = vmatprep.subr.msk.bf16.mxu0 %vm156_vm5, %v2327_v22 }
 0x74e   : > { %2352 = vmatpush1.bf16.msra.mxu0 %v2332_v26 }
 0x751   : > { %2590 = vmatmul.mubr.msk.bf16.vlgmr.msra.gmra.mxu0 %vm3514_vm4, %v2585_v29 }
 0x758   : > { %v2383_v23 = vpop.permute.xlu1 %2382 }
 0x7ed   : > { %v1815_v17 = vpop.f32.mrf.mxu0 }
 0x7ef   : > { %v1817_v59 = vpop.f32.mrf.mxu0 }
 0x7f1   : > { %v1819_v32 = vpop.f32.mrf.mxu0  ;;  %v1881_v31 = vpop.f32.mrf.mxu1 }
 0x7f2   : > { %v1882_v44 = vadd.f32 %v1881_v31, %v1815_v17  ;;  %v2390_v31 = vpop.permute.xlu0 %2389 }
 0x7f3   : > { %v1820_v33 = vpop.f32.mrf.mxu0  ;;  %v1883_v36 = vpop.f32.mrf.mxu1 }
 0x7f4   : > { %v1884_v48 = vadd.f32 %v1883_v36, %v1817_v59 }
 0x7f5   : > { %v1885_v42 = vpop.f32.mrf.mxu1 }
 0x7f7   : > { %v1886_v57 = vpop.f32.mrf.mxu1 }
 0x7f9   : > { %v1951_v38 = vpop.f32.mrf.mxu0 }
 0x7fa   : > { %v1958_v61 = vadd.f32 %v1951_v38, %v1882_v44 }
 0x7fb   : > { %v1953_v28 = vpop.f32.mrf.mxu0 }
 0x7fc   : > { %v1959_v20 = vadd.f32 %v1953_v28, %v1884_v48 }
 0x7fd   : > { %v1955_v47 = vpop.f32.mrf.mxu0  ;;  %v2023_v52 = vpop.f32.mrf.mxu1 }
 0x7fe   : > { %v2030_v49 = vadd.f32 %v2023_v52, %v1958_v61 }
 0x7ff   : > { %v1956_v24 = vpop.f32.mrf.mxu0  ;;  %v2025_v41 = vpop.f32.mrf.mxu1 }
 0x800   : > { %v2031_v54 = vadd.f32 %v2025_v41, %v1959_v20 }
 0x801   : > { %v2027_v16 = vpop.f32.mrf.mxu1  ;;  %v2083_v27 = vpop.f32.mrf.mxu0 }
 0x802   : > { %v2090_v46 = vadd.f32 %v2083_v27, %v2030_v49 }
 0x803   : > { %v2028_v51 = vpop.f32.mrf.mxu1  ;;  %v2085_v35 = vpop.f32.mrf.mxu0 }
 0x804   : > { %v2091_v34 = vadd.f32 %v2085_v35, %v2031_v54 }
 0x805   : > { %v2087_v39 = vpop.f32.mrf.mxu0  ;;  %v2157_v60 = vpop.f32.mrf.mxu1 }
 0x806   : > { %v2164_v50 = vadd.f32 %v2157_v60, %v2090_v46 }
 0x807   : > { %v2088_v62 = vpop.f32.mrf.mxu0  ;;  %v2159_v63 = vpop.f32.mrf.mxu1 }
 0x808   : > { %v2165_v58 = vadd.f32 %v2159_v63, %v2091_v34 }
 0x809   : > { %v2161_v18 = vpop.f32.mrf.mxu1  ;;  %v2229_v40 = vpop.f32.mrf.mxu0 }
 0x80a   : > { %v2236_v53 = vadd.f32 %v2229_v40, %v2164_v50 }
 0x80b   : > { %v2162_v56 = vpop.f32.mrf.mxu1  ;;  %v2231_v21 = vpop.f32.mrf.mxu0 }
 0x80c   : > { %v2237_v25 = vadd.f32 %v2231_v21, %v2165_v58 }
 0x80d   : > { %v2233_v30 = vpop.f32.mrf.mxu0  ;;  %v2299_v37 = vpop.f32.mrf.mxu1 }
 0x80e   : > { %v2306_v55 = vadd.f32 %v2299_v37, %v2236_v53 }
 0x80f   : > { %v2234_v43 = vpop.f32.mrf.mxu0  ;;  %v2301_v0 = vpop.f32.mrf.mxu1 }
 0x810   : > { %v2307_v22 = vadd.f32 %v2301_v0, %v2237_v25 }
 0x811   : > { %v2371_v45 = vpop.f32.mrf.mxu0  ;;  %v2303_v19 = vpop.f32.mrf.mxu1 }
 0x812   : > { %v2378_v26 = vadd.f32 %v2371_v45, %v2306_v55 }
 0x813   : > { %v2373_v29 = vpop.f32.mrf.mxu0  ;;  %v2304_v17 = vpop.f32.mrf.mxu1 }
 0x814   : > { %v2385_v59 = vmul.f32 %v2383_v23, %v2378_v26  ;;  %v2379_v32 = vadd.f32 %v2373_v29, %v2307_v22 }
 0x815   : > { %v2375_v33 = vpop.f32.mrf.mxu0 }
 0x816   : > { %v2392_v36 = vadd.f32 %v2390_v31, %v2385_v59  ;;  %v2386_v42 = vmul.f32 %v2383_v23, %v2379_v32 }
 0x817   : > { %v2376_v57 = vpop.f32.mrf.mxu0 }
 0x818   : > { %v2393_v38 = vadd.f32 %v2390_v31, %v2386_v42  ;;  %v2394_v28 = vmax.f32 %v2392_v36, 0.0 }
 0x81a   : > { %v2395_v47 = vmax.f32 %v2393_v38, 0.0  ;;  %90 = sbr.rel (!%p88_p0) target bundleno = 16 (0x10), region = 138 }
 0x81c   : > { %v2398_v52 = vcombine.low %v2394_v28, %v2395_v47 }
 0x81e   : > { %2402 = vst [vmem:[%s2401_s3] sm:$0xff] %v2398_v52 }

</bundles_post_ra>
